<compile_context>
chip_gen: v7x
topology: tpu7x:2x2x1
jax: 0.10.0
libtpu: 0.0.40
codegen_flags: <defaults>
</compile_context>

<pallas_src>
import jax
import jax.numpy as jnp
from jax.experimental import pallas as pl
from jax.experimental.pallas import tpu as pltpu


def attention_kernel(s_ref, enc_ref, mask_ref, cov_ref,
                     wdec_ref, bdec_ref, wc_ref, v_ref,
                     ct_ref, attn_ref, covout_ref):
    # s_ref    : [tb, n]          query tile (s_t_hat)
    # enc_ref  : [tb, t_k_pad, n] encoder outputs tile
    # mask_ref : [tb, t_k_pad]    padding mask (0 in padded key positions)
    # cov_ref  : [tb, t_k_pad]    coverage
    # wdec_ref : [n, n]           decode_proj weight, pre-transposed
    # bdec_ref : [1, n]           decode_proj bias
    # wc_ref   : [1, n]           W_c weight (Linear(1, n, bias=False)) row
    # v_ref    : [1, n]           v weight  (Linear(n, 1, bias=False)) row
    f32 = jnp.float32
    s    = s_ref[...].astype(f32)
    enc  = enc_ref[...].astype(f32)
    mask = mask_ref[...].astype(f32)
    cov  = cov_ref[...].astype(f32)
    wdec = wdec_ref[...].astype(f32)
    bdec = bdec_ref[...].astype(f32)
    wc   = wc_ref[...].astype(f32)
    v    = v_ref[...].astype(f32)

    # dec_fea = decode_proj(s_t_hat)                              [tb, n]  (MXU)
    dec_fea = jnp.dot(s, wdec, preferred_element_type=f32) + bdec

    # Fused element-wise chain: e = tanh(enc + dec_fea + coverage * W_c).
    # (Single [tb, t_k_pad, n] temporary; f32 keeps the VPU/EUP path legal on
    #  v5e — bf16 would be a further win on v6e/v7x only.)
    e = jnp.tanh(enc + dec_fea[:, None, :] + cov[:, :, None] * wc[None, :, :])

    # scores = v(e)   [tb, t_k_pad]  — small b*t_k, keep the XLU lane reduce.
    scores = jnp.sum(e * v[None, :, :], axis=-1)

    # Fused masked softmax: the first softmax normalization cancels, so
    # attn = exp(s - max) * mask / sum(exp(s - max) * mask)   (exact rewrite).
    scores = scores - jnp.max(scores, axis=-1, keepdims=True)
    w = jnp.exp(scores) * mask
    # approx=True would push this to the EUP at slightly reduced precision.
    inv_norm = pl.reciprocal(jnp.sum(w, axis=-1, keepdims=True), approx=False)
    attn = w * inv_norm

    # c_t = sum_t attn[b,t] * enc[b,t,:]   — VPU multiply + sublane reduce
    # instead of an MXU-starved [1, t_k] x [t_k, n] bmm.
    ct = jnp.sum(attn[:, :, None] * enc, axis=1)

    ct_ref[...] = ct.astype(ct_ref.dtype)
    attn_ref[...] = attn.astype(attn_ref.dtype)
    covout_ref[...] = (cov + attn).astype(covout_ref.dtype)


def _round_up(x, m):
    return ((x + m - 1) // m) * m


@jax.jit
def attention_forward(s_t_hat, encoder_outputs, enc_padding_mask, coverage,
                      w_dec, b_dec, w_c, v_w):
    """w_dec: [n, n] torch (out,in) layout, b_dec: [n], w_c: [n,1], v_w: [1,n]."""
    b, t_k, n = encoder_outputs.shape
    f32 = jnp.float32

    # ---- batch tiling (pipelined grid; "parallel" for v7x megacore) --------
    tile_b = b if b <= 8 else 8            # full-extent or sublane-aligned
    b_pad = _round_up(b, tile_b)
    t_k_pad = _round_up(t_k, 128)          # lane-dense attn / coverage stores

    # ---- pad inputs (mask = 0 in padded key positions keeps softmax exact) -
    s_p   = jnp.pad(s_t_hat, ((0, b_pad - b), (0, 0)))
    enc_p = jnp.pad(encoder_outputs,
                    ((0, b_pad - b), (0, t_k_pad - t_k), (0, 0)))
    mask_p = jnp.pad(enc_padding_mask.astype(f32),
                     ((0, b_pad - b), (0, t_k_pad - t_k)))
    if b_pad > b:
        # padded batch rows get one unmasked key so the softmax normalization
        # never divides by zero (those rows are sliced off below).
        mask_p = mask_p.at[b:, 0].set(1.0)
    cov_p = jnp.pad(coverage, ((0, b_pad - b), (0, t_k_pad - t_k)))

    # ---- parameters in kernel-friendly 2-D layouts -------------------------
    wdec_t = jnp.transpose(w_dec).astype(f32)   # [n_in, n_out]: dec = s @ wdec_t
    bdec   = b_dec.reshape(1, n).astype(f32)
    wc_row = w_c.reshape(1, n).astype(f32)      # Linear(1, n) weight -> row
    v_row  = v_w.reshape(1, n).astype(f32)      # Linear(n, 1) weight -> row

    # ---- explicit VMEM budget (v7x physical ceiling is 64 MiB) -------------
    esize = jnp.dtype(encoder_outputs.dtype).itemsize
    est = 2 * (tile_b * n * 4                       # s (double-buffered)
               + tile_b * t_k_pad * n * esize       # encoder tile
               + 2 * tile_b * t_k_pad * 4           # mask + coverage
               + n * n * 4 + 3 * n * 4              # weights
               + tile_b * n * 4                     # c_t out
               + 2 * tile_b * t_k_pad * 4)          # attn + coverage out
    est += 4 * tile_b * t_k_pad * n * 4             # in-kernel temporaries
    vmem_limit = int(min(max(2 * est, 32 * 1024 * 1024), 48 * 1024 * 1024))

    grid = (b_pad // tile_b,)
    out_shapes = (
        jax.ShapeDtypeStruct((b_pad, n), encoder_outputs.dtype),   # c_t
        jax.ShapeDtypeStruct((b_pad, t_k_pad), f32),               # attn_dist
        jax.ShapeDtypeStruct((b_pad, t_k_pad), cov_p.dtype),       # coverage
    )
    in_specs = [
        pl.BlockSpec((tile_b, n), lambda i: (i, 0)),              # s_t_hat
        pl.BlockSpec((tile_b, t_k_pad, n), lambda i: (i, 0, 0)),  # encoder_outputs
        pl.BlockSpec((tile_b, t_k_pad), lambda i: (i, 0)),        # mask
        pl.BlockSpec((tile_b, t_k_pad), lambda i: (i, 0)),        # coverage
        pl.BlockSpec((n, n), lambda i: (0, 0)),                   # wdec (bcast)
        pl.BlockSpec((1, n), lambda i: (0, 0)),                   # bdec (bcast)
        pl.BlockSpec((1, n), lambda i: (0, 0)),                   # wc   (bcast)
        pl.BlockSpec((1, n), lambda i: (0, 0)),                   # v    (bcast)
    ]
    out_specs = (
        pl.BlockSpec((tile_b, n), lambda i: (i, 0)),
        pl.BlockSpec((tile_b, t_k_pad), lambda i: (i, 0)),
        pl.BlockSpec((tile_b, t_k_pad), lambda i: (i, 0)),
    )

    c_t, attn, cov_out = pl.pallas_call(
        attention_kernel,
        out_shape=out_shapes,
        grid=grid,
        in_specs=in_specs,
        out_specs=out_specs,
        input_output_aliases={3: 2},                # coverage updated in place
        compiler_params=pltpu.CompilerParams(
            dimension_semantics=("parallel",),
            vmem_limit_bytes=vmem_limit),
    )(s_p, enc_p, mask_p, cov_p, wdec_t, bdec, wc_row, v_row)

    return c_t[:b], attn[:b, :t_k], cov_out[:b, :t_k]


def attention_reference(s_t_hat, encoder_outputs, enc_padding_mask, coverage,
                        w_dec, b_dec, w_c, v_w):
    """Pure-JAX reference mirroring the PyTorch forward (is_coverage=True)."""
    b, t_k, n = encoder_outputs.shape
    dec_fea = s_t_hat @ w_dec.T + b_dec
    att = encoder_outputs + dec_fea[:, None, :]
    att = att + coverage[:, :, None] * w_c.reshape(1, 1, n)
    e = jnp.tanh(att)
    scores = (e @ v_w.reshape(n, 1))[..., 0]                 # [b, t_k]
    attn_ = jax.nn.softmax(scores, axis=1) * enc_padding_mask
    attn = attn_ / jnp.sum(attn_, axis=1, keepdims=True)
    c_t = jnp.einsum('bt,btn->bn', attn, encoder_outputs)
    cov_out = coverage + attn
    return c_t, attn, cov_out


if __name__ == "__main__":
    hidden_dim = 64
    n = 2 * hidden_dim          # 128
    b, t_k = 2, 8

    key = jax.random.PRNGKey(0)
    ks = jax.random.split(key, 8)

    # deterministic synthetic parameters (torch Linear convention:
    # weight = [out_features, in_features])
    w_dec = 0.02 * jax.random.normal(ks[0], (n, n), jnp.float32)   # decode_proj.weight
    b_dec = 0.02 * jax.random.normal(ks[1], (n,), jnp.float32)     # decode_proj.bias
    w_c   = 0.02 * jax.random.normal(ks[2], (n, 1), jnp.float32)   # W_c.weight
    v_w   = 0.02 * jax.random.normal(ks[3], (1, n), jnp.float32)   # v.weight

    # deterministic synthetic inputs
    s_t_hat = jax.random.normal(ks[4], (b, n), jnp.float32)
    encoder_outputs = jax.random.normal(ks[5], (b, t_k, n), jnp.float32)
    # padding mask: last two positions of batch 1 are padding
    enc_padding_mask = jnp.ones((b, t_k), jnp.float32).at[1, t_k - 2:].set(0.0)
    coverage = jnp.abs(0.1 * jax.random.normal(ks[6], (b, t_k), jnp.float32))

    c_t, attn_dist, cov_out = attention_forward(
        s_t_hat, encoder_outputs, enc_padding_mask, coverage,
        w_dec, b_dec, w_c, v_w)
    jax.block_until_ready((c_t, attn_dist, cov_out))

    # correctness check against pure-JAX reference
    c_ref, a_ref, cv_ref = attention_reference(
        s_t_hat, encoder_outputs, enc_padding_mask, coverage,
        w_dec, b_dec, w_c, v_w)
    assert jnp.allclose(c_t, c_ref, atol=1e-4, rtol=1e-4), "c_t mismatch"
    assert jnp.allclose(attn_dist, a_ref, atol=1e-4, rtol=1e-4), "attn_dist mismatch"
    assert jnp.allclose(cov_out, cv_ref, atol=1e-4, rtol=1e-4), "coverage mismatch"

    print("KERNEL_OK")
</pallas_src>

<mosaic_0001>
module attributes {stable_mosaic.version = 11 : i64} {
  func.func @attention_kernel(%arg0: i32, %arg1: memref<2x128xf32, #tpu.memory_space<vmem>>, %arg2: memref<2x128x128xf32, #tpu.memory_space<vmem>>, %arg3: memref<2x128xf32, #tpu.memory_space<vmem>>, %arg4: memref<2x128xf32, #tpu.memory_space<vmem>>, %arg5: memref<128x128xf32, #tpu.memory_space<vmem>>, %arg6: memref<1x128xf32, #tpu.memory_space<vmem>>, %arg7: memref<1x128xf32, #tpu.memory_space<vmem>>, %arg8: memref<1x128xf32, #tpu.memory_space<vmem>>, %arg9: memref<2x128xf32, #tpu.memory_space<vmem>>, %arg10: memref<2x128xf32, #tpu.memory_space<vmem>>, %arg11: memref<2x128xf32, #tpu.memory_space<vmem>>) attributes {dimension_semantics = [#tpu.dimension_semantics<parallel>], iteration_bounds = array<i64: 1>, scalar_prefetch = 0 : i64, scratch_operands = 0 : i64, tpu.core_type = #tpu.core_type<tc>, window_params = [{transform_indices = @transform_0, window_bounds = array<i64: 2, 128>}, {transform_indices = @transform_1, window_bounds = array<i64: 2, 128, 128>}, {transform_indices = @transform_2, window_bounds = array<i64: 2, 128>}, {transform_indices = @transform_3, window_bounds = array<i64: 2, 128>}, {pipeline_mode = #tpu.pipeline_mode<synchronous>, transform_indices = @transform_4, window_bounds = array<i64: 128, 128>}, {pipeline_mode = #tpu.pipeline_mode<synchronous>, transform_indices = @transform_5, window_bounds = array<i64: 1, 128>}, {pipeline_mode = #tpu.pipeline_mode<synchronous>, transform_indices = @transform_6, window_bounds = array<i64: 1, 128>}, {pipeline_mode = #tpu.pipeline_mode<synchronous>, transform_indices = @transform_7, window_bounds = array<i64: 1, 128>}, {transform_indices = @transform_8, window_bounds = array<i64: 2, 128>}, {transform_indices = @transform_9, window_bounds = array<i64: 2, 128>}, {transform_indices = @transform_10, window_bounds = array<i64: 2, 128>}]} {
    %c0 = arith.constant 0 : index
    %c0_0 = arith.constant 0 : index
    %0 = vector.load %arg1[%c0, %c0_0] : memref<2x128xf32, #tpu.memory_space<vmem>>, vector<2x128xf32>
    %c0_1 = arith.constant 0 : index
    %c0_2 = arith.constant 0 : index
    %c0_3 = arith.constant 0 : index
    %1 = vector.load %arg2[%c0_1, %c0_2, %c0_3] : memref<2x128x128xf32, #tpu.memory_space<vmem>>, vector<2x128x128xf32>
    %c0_4 = arith.constant 0 : index
    %c0_5 = arith.constant 0 : index
    %2 = vector.load %arg3[%c0_4, %c0_5] : memref<2x128xf32, #tpu.memory_space<vmem>>, vector<2x128xf32>
    %c0_6 = arith.constant 0 : index
    %c0_7 = arith.constant 0 : index
    %3 = vector.load %arg4[%c0_6, %c0_7] : memref<2x128xf32, #tpu.memory_space<vmem>>, vector<2x128xf32>
    %c0_8 = arith.constant 0 : index
    %c0_9 = arith.constant 0 : index
    %4 = vector.load %arg5[%c0_8, %c0_9] : memref<128x128xf32, #tpu.memory_space<vmem>>, vector<128x128xf32>
    %c0_10 = arith.constant 0 : index
    %c0_11 = arith.constant 0 : index
    %5 = vector.load %arg6[%c0_10, %c0_11] : memref<1x128xf32, #tpu.memory_space<vmem>>, vector<1x128xf32>
    %c0_12 = arith.constant 0 : index
    %c0_13 = arith.constant 0 : index
    %6 = vector.load %arg7[%c0_12, %c0_13] : memref<1x128xf32, #tpu.memory_space<vmem>>, vector<1x128xf32>
    %c0_14 = arith.constant 0 : index
    %c0_15 = arith.constant 0 : index
    %7 = vector.load %arg8[%c0_14, %c0_15] : memref<1x128xf32, #tpu.memory_space<vmem>>, vector<1x128xf32>
    %cst = arith.constant dense<0.000000e+00> : vector<2x128xf32>
    %8 = tpu.matmul %0, %4, %cst {dimension_numbers = #tpu.dot_dimension_numbers<[1], [0], [0], [1], [0, 0, 1, 1], [], []>} : vector<2x128xf32>, vector<128x128xf32>, vector<2x128xf32> -> vector<2x128xf32>
    %9 = vector.broadcast %5 : vector<1x128xf32> to vector<2x128xf32>
    %10 = arith.addf %8, %9 : vector<2x128xf32>
    %11 = vector.shape_cast %10 : vector<2x128xf32> to vector<2x1x128xf32>
    %12 = vector.broadcast %11 : vector<2x1x128xf32> to vector<2x128x128xf32>
    %13 = arith.addf %1, %12 : vector<2x128x128xf32>
    %14 = vector.shape_cast %3 : vector<2x128xf32> to vector<2x128x1xf32>
    %15 = vector.shape_cast %6 : vector<1x128xf32> to vector<1x1x128xf32>
    %16 = vector.broadcast %14 : vector<2x128x1xf32> to vector<2x128x128xf32>
    %17 = vector.broadcast %15 : vector<1x1x128xf32> to vector<2x128x128xf32>
    %18 = arith.mulf %16, %17 : vector<2x128x128xf32>
    %19 = arith.addf %13, %18 : vector<2x128x128xf32>
    %20 = math.tanh %19 : vector<2x128x128xf32>
    %21 = vector.shape_cast %7 : vector<1x128xf32> to vector<1x1x128xf32>
    %22 = vector.broadcast %21 : vector<1x1x128xf32> to vector<2x128x128xf32>
    %23 = arith.mulf %20, %22 : vector<2x128x128xf32>
    %cst_16 = arith.constant dense<0.000000e+00> : vector<2x128xf32>
    %24 = vector.multi_reduction <add>, %23, %cst_16 [2] : vector<2x128x128xf32> to vector<2x128xf32>
    %cst_17 = arith.constant dense<0xFF800000> : vector<2xf32>
    %25 = vector.multi_reduction <maximumf>, %24, %cst_17 [1] : vector<2x128xf32> to vector<2xf32>
    %26 = vector.shape_cast %25 : vector<2xf32> to vector<2x1xf32>
    %27 = vector.broadcast %26 : vector<2x1xf32> to vector<2x128xf32>
    %28 = arith.subf %24, %27 : vector<2x128xf32>
    %29 = math.exp %28 : vector<2x128xf32>
    %30 = arith.mulf %29, %2 : vector<2x128xf32>
    %cst_18 = arith.constant dense<0.000000e+00> : vector<2xf32>
    %31 = vector.multi_reduction <add>, %30, %cst_18 [1] : vector<2x128xf32> to vector<2xf32>
    %32 = vector.shape_cast %31 : vector<2xf32> to vector<2x1xf32>
    %33 = tpu.reciprocal %32 : vector<2x1xf32> -> vector<2x1xf32>
    %34 = vector.broadcast %33 : vector<2x1xf32> to vector<2x128xf32>
    %35 = arith.mulf %30, %34 : vector<2x128xf32>
    %36 = vector.shape_cast %35 : vector<2x128xf32> to vector<2x128x1xf32>
    %37 = vector.broadcast %36 : vector<2x128x1xf32> to vector<2x128x128xf32>
    %38 = arith.mulf %37, %1 : vector<2x128x128xf32>
    %cst_19 = arith.constant dense<0.000000e+00> : vector<2x128xf32>
    %39 = vector.multi_reduction <add>, %38, %cst_19 [1] : vector<2x128x128xf32> to vector<2x128xf32>
    %c0_20 = arith.constant 0 : index
    %c0_21 = arith.constant 0 : index
    %40 = vector.load %arg9[%c0_20, %c0_21] : memref<2x128xf32, #tpu.memory_space<vmem>>, vector<2x128xf32>
    tpu.vector_store %arg9[%c0_20, %c0_21], %39 {strides = array<i32>} : memref<2x128xf32, #tpu.memory_space<vmem>>, vector<2x128xf32>,
    %c0_22 = arith.constant 0 : index
    %c0_23 = arith.constant 0 : index
    %41 = vector.load %arg10[%c0_22, %c0_23] : memref<2x128xf32, #tpu.memory_space<vmem>>, vector<2x128xf32>
    tpu.vector_store %arg10[%c0_22, %c0_23], %35 {strides = array<i32>} : memref<2x128xf32, #tpu.memory_space<vmem>>, vector<2x128xf32>,
    %42 = arith.addf %3, %35 : vector<2x128xf32>
    %c0_24 = arith.constant 0 : index
    %c0_25 = arith.constant 0 : index
    %43 = vector.load %arg11[%c0_24, %c0_25] : memref<2x128xf32, #tpu.memory_space<vmem>>, vector<2x128xf32>
    tpu.vector_store %arg11[%c0_24, %c0_25], %42 {strides = array<i32>} : memref<2x128xf32, #tpu.memory_space<vmem>>, vector<2x128xf32>,
    return
  }
  func.func @transform_0(%arg0: i32) -> (i32, i32) {
    %c0_i32 = arith.constant 0 : i32
    %c0_i32_0 = arith.constant 0 : i32
    return %arg0, %c0_i32 : i32, i32
  }
  func.func @transform_1(%arg0: i32) -> (i32, i32, i32) {
    %c0_i32 = arith.constant 0 : i32
    %c0_i32_0 = arith.constant 0 : i32
    %c0_i32_1 = arith.constant 0 : i32
    return %arg0, %c0_i32, %c0_i32_0 : i32, i32, i32
  }
  func.func @transform_2(%arg0: i32) -> (i32, i32) {
    %c0_i32 = arith.constant 0 : i32
    %c0_i32_0 = arith.constant 0 : i32
    return %arg0, %c0_i32 : i32, i32
  }
  func.func @transform_3(%arg0: i32) -> (i32, i32) {
    %c0_i32 = arith.constant 0 : i32
    %c0_i32_0 = arith.constant 0 : i32
    return %arg0, %c0_i32 : i32, i32
  }
  func.func @transform_4(%arg0: i32) -> (i32, i32) {
    %c0_i32 = arith.constant 0 : i32
    %c0_i32_0 = arith.constant 0 : i32
    %c0_i32_1 = arith.constant 0 : i32
    return %c0_i32, %c0_i32_0 : i32, i32
  }
  func.func @transform_5(%arg0: i32) -> (i32, i32) {
    %c0_i32 = arith.constant 0 : i32
    %c0_i32_0 = arith.constant 0 : i32
    %c0_i32_1 = arith.constant 0 : i32
    return %c0_i32, %c0_i32_0 : i32, i32
  }
  func.func @transform_6(%arg0: i32) -> (i32, i32) {
    %c0_i32 = arith.constant 0 : i32
    %c0_i32_0 = arith.constant 0 : i32
    %c0_i32_1 = arith.constant 0 : i32
    return %c0_i32, %c0_i32_0 : i32, i32
  }
  func.func @transform_7(%arg0: i32) -> (i32, i32) {
    %c0_i32 = arith.constant 0 : i32
    %c0_i32_0 = arith.constant 0 : i32
    %c0_i32_1 = arith.constant 0 : i32
    return %c0_i32, %c0_i32_0 : i32, i32
  }
  func.func @transform_8(%arg0: i32) -> (i32, i32) {
    %c0_i32 = arith.constant 0 : i32
    %c0_i32_0 = arith.constant 0 : i32
    return %arg0, %c0_i32 : i32, i32
  }
  func.func @transform_9(%arg0: i32) -> (i32, i32) {
    %c0_i32 = arith.constant 0 : i32
    %c0_i32_0 = arith.constant 0 : i32
    return %arg0, %c0_i32 : i32, i32
  }
  func.func @transform_10(%arg0: i32) -> (i32, i32) {
    %c0_i32 = arith.constant 0 : i32
    %c0_i32_0 = arith.constant 0 : i32
    return %arg0, %c0_i32 : i32, i32
  }
}

</mosaic_0001>

<bundles_post_ra>
// kernel: attention_forward.1
= control target key start
LH: loop header
LB: loop body
LE: loop exit
PB: predicated region body
PF: predicated region fallthrough
CT: control target
= control target key end

     0   :  { %16 = vsyncpa [#allocation3], 0  ;;  %v168_v3 = vlaneseq  ;;  %v2170_v4 = vmov 0.0|0.0   ;;  %vm2171_vm0 = vmmov 0   ;;  %v2172_v7 = vmov 0.0   ;;  %s3437_s0 = inlined_call_operand.vmem [shape: f32[2,128], index: 0, kind: input, shape index: {}]   ;;  %s3438_s1 = inlined_call_operand.vmem [shape: f32[2,128,128], index: 1, kind: input, shape index: {}]   ;;  %s3439_s2 = inlined_call_operand.vmem [shape: f32[2,128], index: 2, kind: input, shape index: {}]   ;;  %s3440_s3 = inlined_call_operand.vmem [shape: f32[2,128], index: 3, kind: input, shape index: {}, may-alias: {3,10}]   ;;  %s3441_s4 = inlined_call_operand.vmem [shape: f32[128,128], index: 4, kind: input, shape index: {}]   ;;  %s3442_s5 = inlined_call_operand.vmem [shape: f32[1,128], index: 5, kind: input, shape index: {}]   ;;  %s3443_s6 = inlined_call_operand.vmem [shape: f32[1,128], index: 6, kind: input, shape index: {}]   ;;  %s3444_s7 = inlined_call_operand.vmem [shape: f32[1,128], index: 7, kind: input, shape index: {}]   ;;  %s3445_s8 = inlined_call_operand.hbm [shape: f32[2,128], index: 8, kind: output, shape index: {0}]   ;;  %s3446_s9 = inlined_call_operand.hbm [shape: f32[2,128], index: 9, kind: output, shape index: {1}]   ;;  %s3447_s10 = inlined_call_operand.vmem [shape: f32[2,128], index: 10, kind: output, shape index: {2}, may-alias: {3,10}]  }
   0x1   :  { %v69_v0 = vld [vmem:[%s3441_s4] sm:$0xff]  ;;  %v70_v1 = vld [vmem:[%s3441_s4 + $0x8] sm:$0xff]  ;;  %v71_v2 = vld [vmem:[%s3441_s4 + $0x10] sm:$0xff]  ;;  %1926 = vmatprep.subr.bf16.mxu0 %v2170_v4  ;;  %1923 = vmatprep.mubr.msk.f32.mxu0 %vm2171_vm0, %v2172_v7 }
   0x2   :  { %v1927_v5 = vpack.c.bf16 %v70_v1, %v69_v0  ;;  %v72_v6 = vld [vmem:[%s3441_s4 + $0x18] sm:$0xff]  ;;  %v2245_v8 = vshrl.u32 %v168_v3, 7  ;;  %v73_v10 = vld [vmem:[%s3441_s4 + $0x20] sm:$0xff]  ;;  %v74_v11 = vld [vmem:[%s3441_s4 + $0x28] sm:$0xff] }
   0x3   :  { %v1930_v9 = vpack.c.bf16 %v72_v6, %v71_v2  ;;  %v68_v14 = vld [vmem:[%s3440_s3] sm:$0x3] }
   0x4   :  { %1928 = vmatpush3.bf16.msra.mxu0 %v1927_v5  ;;  %v2254_v12 = vsub.s32 0, %v2245_v8  ;;  %v2257_v13 = vsub.s32 1, %v2245_v8 }
   0x5   :  { %1929 = vmatprep.subr.bf16.mxu0 %v2170_v4 }
   0x6   :  { %3494 = vst [vmem:[#allocation8_spill] sm:$0xff] %v2254_v12  ;;  %3495 = vst [vmem:[#allocation9_spill] sm:$0xff] %v2257_v13  ;;  %v2263_v15 = vrot.slane %v68_v14, %v2254_v12  ;;  %v2266_v16 = vrot.slane %v68_v14, %v2257_v13 }
   0x7   :  { %17 = vsyncpa [#allocation5], 0  ;;  %v1933_v17 = vpack.c.bf16 %v74_v11, %v73_v10  ;;  %v75_v18 = vld [vmem:[%s3441_s4 + $0x30] sm:$0xff]  ;;  %v76_v19 = vld [vmem:[%s3441_s4 + $0x38] sm:$0xff]  ;;  %v2173_v51 = vmov 1966171168  }
   0x8   :  { %1931 = vmatpush3.bf16.msra.mxu0 %v1930_v9  ;;  %234 = vbcast.lane.b32.xlu0 %v2263_v15, 256  ;;  %v1936_v20 = vpack.c.bf16 %v76_v19, %v75_v18  ;;  %v77_v21 = vld [vmem:[%s3441_s4 + $0x40] sm:$0xff]  ;;  %v78_v22 = vld [vmem:[%s3441_s4 + $0x48] sm:$0xff]  ;;  %v79_v24 = vld [vmem:[%s3441_s4 + $0x50] sm:$0xff]  ;;  %v166_v52 = vunpack.c.l.s4 %v2173_v51  ;;  %vm610_vm1 = vcmask 130112   ;;  %vm617_vm2 = vcmask 195712  }
   0x9   :  { %1932 = vmatprep.subr.bf16.mxu0 %v2170_v4  ;;  %301 = vbcast.lane.b32.xlu1 %v2266_v16, 256  ;;  %v1939_v23 = vpack.c.bf16 %v78_v22, %v77_v21  ;;  %v80_v25 = vld [vmem:[%s3441_s4 + $0x58] sm:$0xff]  ;;  %v81_v27 = vld [vmem:[%s3441_s4 + $0x60] sm:$0xff]  ;;  %v82_v28 = vld [vmem:[%s3441_s4 + $0x68] sm:$0xff]  ;;  %vm624_vm3 = vcmask 261312   ;;  %vm631_vm4 = vcmask 326912  }
   0xa   :  { %v1942_v26 = vpack.c.bf16 %v80_v25, %v79_v24  ;;  %v1945_v29 = vpack.c.bf16 %v82_v28, %v81_v27  ;;  %v83_v30 = vld [vmem:[%s3441_s4 + $0x70] sm:$0xff]  ;;  %v84_v31 = vld [vmem:[%s3441_s4 + $0x78] sm:$0xff]  ;;  %v34_v33 = vld [vmem:[%s3437_s0] sm:$0x3]  ;;  %v167_v54 = vunpack.c.0.s8 %v166_v52  ;;  %vm638_vm5 = vcmask 392512   ;;  %s2175_s13 = smov [#allocation4]  }
   0xb   :  { %v1948_v32 = vpack.c.bf16 %v84_v31, %v83_v30  ;;  %v1871_v56 = vld [vmem:[%s3442_s5] ss:$0 sm:$0xff]  ;;  %v36_v9 = vld [vmem:[%s3438_s1 + $0x8] sm:$0xff]  ;;  %v66_v14 = vld [vmem:[%s3438_s1 + $0xf8] sm:$0xff]  ;;  %vm645_vm6 = vcmask 458112   ;;  %vm3493_vm7 = vcmask 523712  }
   0xc   :  { %1934 = vmatpush3.bf16.msra.mxu0 %v1933_v17  ;;  %238 = vbcast.lane.b32.xlu0 %v2263_v15, 264  ;;  %v170_v57 = vsub.s32 %v167_v54, %v2245_v8  ;;  %v2366_v2 = vld [vmem:[%s3443_s6] ss:$0 sm:$0xff]  ;;  %v38_v28 = vld [vmem:[%s3438_s1 + $0x18] sm:$0xff]  ;;  %v52_v31 = vld [vmem:[%s3438_s1 + $0x88] sm:$0xff]  ;;  %vm3492_vm8 = vcmask 589312  }
   0xd   :  { %1935 = vmatprep.subr.bf16.mxu0 %v2170_v4  ;;  %305 = vbcast.lane.b32.xlu1 %v2266_v16, 264  ;;  %v35_v10 = vld [vmem:[%s3438_s1] sm:$0xff]  ;;  %v53_v54 = vld [vmem:[%s3438_s1 + $0x90] sm:$0xff]  ;;  %vm666_vm9 = vcmask 654912   ;;  %vm673_vm10 = vcmask 720512   ;;  %vm3456_vm11 = vcmask 786112  }
   0xe   :  { %v51_v19 = vld [vmem:[%s3438_s1 + $0x80] sm:$0xff]  ;;  %vm687_vm12 = vcmask 851712   ;;  %vm694_vm13 = vcmask 917312   ;;  %vm701_vm14 = vcmask 982912   ;;  %vm708_vm15 = vcmask 1048512  }
   0xf   :  { %v39_v52 = vld [vmem:[%s3438_s1 + $0x20] sm:$0xff]  ;;  %vm789_vm0 = vcmask 1041409  }
  0x10   :  { %1937 = vmatpush3.bf16.msra.mxu0 %v1936_v20  ;;  %242 = vbcast.lane.b32.xlu0 %v2263_v15, 272 }
  0x11   :  { %1938 = vmatprep.subr.bf16.mxu0 %v2170_v4  ;;  %309 = vbcast.lane.b32.xlu1 %v2266_v16, 272 }
  0x14   :  { %1940 = vmatpush3.bf16.msra.mxu0 %v1939_v23  ;;  %246 = vbcast.lane.b32.xlu0 %v2263_v15, 280 }
  0x15   :  { %1941 = vmatprep.subr.bf16.mxu0 %v2170_v4  ;;  %313 = vbcast.lane.b32.xlu1 %v2266_v16, 280 }
  0x18   :  { %1943 = vmatpush3.bf16.msra.mxu0 %v1942_v26  ;;  %250 = vbcast.lane.b32.xlu0 %v2263_v15, 288 }
  0x19   :  { %1944 = vmatprep.subr.bf16.mxu0 %v2170_v4  ;;  %317 = vbcast.lane.b32.xlu1 %v2266_v16, 288 }
  0x1c   :  { %1946 = vmatpush3.bf16.msra.mxu0 %v1945_v29  ;;  %254 = vbcast.lane.b32.xlu0 %v2263_v15, 296 }
  0x1d   :  { %1947 = vmatprep.subr.bf16.mxu0 %v2170_v4  ;;  %321 = vbcast.lane.b32.xlu1 %v2266_v16, 296 }
  0x20   :  { %1949 = vmatpush3.bf16.msra.mxu0 %v1948_v32  ;;  %258 = vbcast.lane.b32.xlu0 %v2263_v15, 304 }
  0x21   :  { %325 = vbcast.lane.b32.xlu1 %v2266_v16, 304 }
  0x23   :  { %1924 = vmatmul.mubr.f32.vlgmr.msra.gmra.mrb[0].mxu0 %v34_v33 }
  0x24   :  { %262 = vbcast.lane.b32.xlu0 %v2263_v15, 312 }
  0x25   :  { %329 = vbcast.lane.b32.xlu1 %v2266_v16, 312 }
  0x28   :  { %266 = vbcast.lane.b32.xlu0 %v2263_v15, 320 }
  0x29   :  { %333 = vbcast.lane.b32.xlu1 %v2266_v16, 320 }
  0x2c   :  { %270 = vbcast.lane.b32.xlu0 %v2263_v15, 328 }
  0x2d   :  { %337 = vbcast.lane.b32.xlu1 %v2266_v16, 328 }
  0x30   :  { %274 = vbcast.lane.b32.xlu0 %v2263_v15, 336 }
  0x31   :  { %341 = vbcast.lane.b32.xlu1 %v2266_v16, 336 }
  0x34   :  { %278 = vbcast.lane.b32.xlu0 %v2263_v15, 344 }
  0x35   :  { %345 = vbcast.lane.b32.xlu1 %v2266_v16, 344 }
  0x38   :  { %282 = vbcast.lane.b32.xlu0 %v2263_v15, 352 }
  0x39   :  { %349 = vbcast.lane.b32.xlu1 %v2266_v16, 352 }
  0x3c   :  { %286 = vbcast.lane.b32.xlu0 %v2263_v15, 360 }
  0x3d   :  { %353 = vbcast.lane.b32.xlu1 %v2266_v16, 360 }
  0x40   :  { %290 = vbcast.lane.b32.xlu0 %v2263_v15, 368 }
  0x41   :  { %357 = vbcast.lane.b32.xlu1 %v2266_v16, 368 }
  0x44   :  { %294 = vbcast.lane.b32.xlu0 %v2263_v15, 376  ;;  %v37_v15 = vld [vmem:[%s3438_s1 + $0x10] sm:$0xff] }
  0x45   :  { %361 = vbcast.lane.b32.xlu1 %v2266_v16, 376 }
  0x7a   :  { %v235_v43 = vpop.permute.xlu0 %234 }
  0x7b   :  { %v302_v34 = vpop.permute.xlu1 %301  ;;  %v369_v20 = vmul.f32 %v2366_v2, %v235_v43 }
  0x7c   :  { %v385_v25 = vmul.f32 %v2366_v2, %v302_v34 }
  0x7e   :  { %v239_v45 = vpop.permute.xlu0 %238 }
  0x7f   :  { %v306_v35 = vpop.permute.xlu1 %305  ;;  %v370_v16 = vmul.f32 %v2366_v2, %v239_v45 }
  0x80   :  { %v386_v34 = vmul.f32 %v2366_v2, %v306_v35 }
  0x82   :  { %v243_v47 = vpop.permute.xlu0 %242 }
  0x83   :  { %v2333_v36 = vpop.permute.xlu1 %309  ;;  %v371_v22 = vmul.f32 %v2366_v2, %v243_v47 }
  0x86   :  { %v247_v49 = vpop.permute.xlu0 %246 }
  0x87   :  { %v2335_v37 = vpop.permute.xlu1 %313  ;;  %v372_v33 = vmul.f32 %v2366_v2, %v247_v49 }
  0x8a   :  { %v251_v53 = vpop.permute.xlu0 %250 }
  0x8b   :  { %v2337_v38 = vpop.permute.xlu1 %317  ;;  %v373_v49 = vmul.f32 %v2366_v2, %v251_v53 }
  0x8e   :  { %v255_v58 = vpop.permute.xlu0 %254 }
  0x8f   :  { %v2339_v39 = vpop.permute.xlu1 %321  ;;  %v374_v53 = vmul.f32 %v2366_v2, %v255_v58  ;;  %v2439_v58 = vld [vmem:[%s3444_s7] ss:$0 sm:$0xff]  ;;  %s1855_s7 = sshll.u32 %s2175_s13, 4  ;;  %s1856_s7 = int_to_ptr.vmem [resolvable:$true] %s1855_s7 }
  0x90   :  { %p2127_p1 = scmp.lt.s32.totalorder %s1856_s7, %s1856_s7 }
  0x92   :  { %v2368_v4 = vpop.permute.xlu0 %258 }
  0x93   :  { %v2341_v40 = vpop.permute.xlu1 %325 }
  0x96   :  { %v263_v26 = vpop.permute.xlu0 %262 }
  0x97   :  { %v2343_v41 = vpop.permute.xlu1 %329 }
  0x9b   :  { %v2345_v42 = vpop.permute.xlu1 %333 }
  0x9f   :  { %v2347_v44 = vpop.permute.xlu1 %337 }
  0xa3   :  { %v2349_v46 = vpop.permute.xlu1 %341 }
  0xa7   :  { %v2351_v48 = vpop.permute.xlu1 %345 }
  0xab   :  { %v2353_v50 = vpop.permute.xlu1 %349 }
  0xaf   :  { %v2355_v55 = vpop.permute.xlu1 %353 }
  0xb3   :  { %v2361_v62 = vpop.permute.xlu1 %357 }
  0xb7   :  { %v362_v7 = vpop.permute.xlu1 %361 }
  0xb8   :  { %v400_v17 = vmul.f32 %v2366_v2, %v362_v7 }
  0xf6   :  { %v160_v59 = vpop.f32.mrb[0].mxu0 }
  0xf7   :  { %v161_v60 = vadd.f32 %v1871_v56, %v160_v59  ;;  %v1925_v61 = vpop.f32.mrb[1].mxu0  ;;  %v267_v56 = vpop.permute.xlu0 %266  ;;  %v387_v59 = vmul.f32 %v2366_v2, %v2333_v36  ;;  %v388_v36 = vmul.f32 %v2366_v2, %v2335_v37  ;;  %v389_v37 = vmul.f32 %v2366_v2, %v2337_v38 }
  0xf9   :  { %v171_v63 = vrot.slane %v161_v60, %v170_v57 }
  0xfb   :  { %v172_v0 = vcombine.high %v171_v63, %v171_v63  ;;  %v179_v1 = vrot.slane %v171_v63, %v170_v57  ;;  %v40_v63 = vld [vmem:[%s3438_s1 + $0x28] sm:$0xff]  ;;  %v271_v7 = vpop.permute.xlu0 %270 }
  0xfd   :  { %v186_v5 = vrot.slane %v172_v0, %v170_v57  ;;  %v2371_v6 = vrot.slane %v179_v1, %v2254_v12  ;;  %v54_v0 = vld [vmem:[%s3438_s1 + $0x98] sm:$0xff] }
  0xff   :  { %v2380_v11 = vrot.slane %v186_v5, %v2254_v12  ;;  %v198_v18 = vadd.f32 %v2371_v6, %v36_v9  ;;  %v197_v21 = vadd.f32 %v2371_v6, %v35_v10  ;;  %v199_v24 = vadd.f32 %v2371_v6, %v37_v15  ;;  %v55_v15 = vld [vmem:[%s3438_s1 + $0xa0] sm:$0xff] }
 0x100   :  { %v200_v45 = vadd.f32 %v2371_v6, %v38_v28  ;;  %v201_v35 = vadd.f32 %v2371_v6, %v39_v52  ;;  %v202_v5 = vadd.f32 %v2371_v6, %v40_v63 }
 0x101   :  { %v228_v23 = vadd.f32 %v2380_v11, %v66_v14  ;;  %v213_v27 = vadd.f32 %v2380_v11, %v51_v19  ;;  %v402_v30 = vadd.f32 %v370_v16, %v198_v18  ;;  %v401_v32 = vadd.f32 %v369_v20, %v197_v21  ;;  %v41_v14 = vld [vmem:[%s3438_s1 + $0x30] sm:$0xff] }
 0x102   :  { %v403_v43 = vadd.f32 %v371_v22, %v199_v24  ;;  %v214_v51 = vadd.f32 %v2380_v11, %v52_v31  ;;  %v404_v57 = vadd.f32 %v372_v33, %v200_v45  ;;  %v215_v61 = vadd.f32 %v2380_v11, %v53_v54 }
 0x103   :  { %v432_v29 = vadd.f32 %v400_v17, %v228_v23  ;;  %v417_v47 = vadd.f32 %v385_v25, %v213_v27  ;;  %v405_v1 = vadd.f32 %v373_v49, %v201_v35  ;;  %v216_v10 = vadd.f32 %v2380_v11, %v54_v0  ;;  %v42_v25 = vld [vmem:[%s3438_s1 + $0x38] sm:$0xff] }
 0x104   :  { %v418_v60 = vadd.f32 %v386_v34, %v214_v51  ;;  %v419_v9 = vadd.f32 %v387_v59, %v215_v61  ;;  %v375_v18 = vmul.f32 %v2366_v2, %v2368_v4  ;;  %v406_v19 = vadd.f32 %v374_v53, %v202_v5  ;;  %v56_v4 = vld [vmem:[%s3438_s1 + $0xa8] sm:$0xff] }
 0x105   :  { %1959 = vtanh.f32 %v432_v29  ;;  %v203_v20 = vadd.f32 %v2371_v6, %v41_v14  ;;  %v420_v23 = vadd.f32 %v388_v36, %v216_v10  ;;  %v217_v24 = vadd.f32 %v2380_v11, %v55_v15  ;;  %v44_v53 = vld [vmem:[%s3438_s1 + $0x48] sm:$0xff] }
 0x106   :  { %1961 = vtanh.f32 %v402_v30  ;;  %v390_v29 = vmul.f32 %v2366_v2, %v2339_v39  ;;  %v275_v30 = vpop.permute.xlu0 %274  ;;  %v43_v39 = vld [vmem:[%s3438_s1 + $0x40] sm:$0xff]  ;;  %v391_v49 = vmul.f32 %v2366_v2, %v2341_v40  ;;  %v392_v36 = vmul.f32 %v2366_v2, %v2343_v41 }
 0x107   :  { %1963 = vtanh.f32 %v401_v32  ;;  %v376_v32 = vmul.f32 %v2366_v2, %v263_v26  ;;  %v407_v33 = vadd.f32 %v375_v18, %v203_v20  ;;  %v421_v34 = vadd.f32 %v389_v37, %v217_v24  ;;  %v57_v26 = vld [vmem:[%s3438_s1 + $0xb0] sm:$0xff] }
 0x108   :  { %1965 = vtanh.f32 %v403_v43  ;;  %v204_v43 = vadd.f32 %v2371_v6, %v42_v25  ;;  %v205_v59 = vadd.f32 %v2371_v6, %v43_v39  ;;  %v219_v0 = vadd.f32 %v2380_v11, %v57_v26 }
 0x109   :  { %1967 = vtanh.f32 %v417_v47  ;;  %v218_v47 = vadd.f32 %v2380_v11, %v56_v4  ;;  %v206_v14 = vadd.f32 %v2371_v6, %v44_v53  ;;  %v393_v20 = vmul.f32 %v2366_v2, %v2345_v42  ;;  %v46_v4 = vld [vmem:[%s3438_s1 + $0x58] sm:$0xff]  ;;  %v48_v53 = vld [vmem:[%s3438_s1 + $0x68] sm:$0xff] }
 0x10a   :  { %1969 = vtanh.f32 %v404_v57  ;;  %v377_v57 = vmul.f32 %v2366_v2, %v267_v56  ;;  %v408_v35 = vadd.f32 %v376_v32, %v204_v43  ;;  %v58_v56 = vld [vmem:[%s3438_s1 + $0xb8] sm:$0xff]  ;;  %v394_v32 = vmul.f32 %v2366_v2, %v2347_v44 }
 0x10b   :  { %1971 = vtanh.f32 %v418_v60  ;;  %v279_v60 = vpop.permute.xlu0 %278  ;;  %v422_v63 = vadd.f32 %v390_v29, %v218_v47  ;;  %v220_v37 = vadd.f32 %v2380_v11, %v58_v56  ;;  %v60_v29 = vld [vmem:[%s3438_s1 + $0xc8] sm:$0xff] }
 0x10c   :  { %1973 = vtanh.f32 %v405_v1  ;;  %v409_v10 = vadd.f32 %v377_v57, %v205_v59  ;;  %v395_v57 = vmul.f32 %v2366_v2, %v2349_v46 }
 0x10d   :  { %1975 = vtanh.f32 %v419_v9  ;;  %v378_v9 = vmul.f32 %v2366_v2, %v271_v7  ;;  %v59_v7 = vld [vmem:[%s3438_s1 + $0xc0] sm:$0xff] }
 0x10e   :  { %1977 = vtanh.f32 %v406_v19 }
 0x10f   :  { %v1960_v16 = vpop.eup %1959  ;;  %1979 = vtanh.f32 %v420_v23  ;;  %v410_v23 = vadd.f32 %v378_v9, %v206_v14  ;;  %v210_v14 = vadd.f32 %v2371_v6, %v48_v53 }
 0x110   :  { %v1962_v17 = vpop.eup %1961  ;;  %v2461_v31 = vmul.f32 %v1960_v16, %v2439_v58  ;;  %1981 = vtanh.f32 %v407_v33  ;;  %v423_v16 = vadd.f32 %v391_v49, %v219_v0  ;;  %v380_v33 = vmul.f32 %v2366_v2, %v279_v60 }
 0x111   :  { %v1964_v21 = vpop.eup %1963  ;;  %v472_v22 = vmul.f32 %v1962_v17, %v2439_v58  ;;  %1983 = vtanh.f32 %v421_v34  ;;  %v45_v17 = vld [vmem:[%s3438_s1 + $0x50] sm:$0xff] }
 0x112   :  { %v1966_v38 = vpop.eup %1965  ;;  %v471_v27 = vmul.f32 %v1964_v21, %v2439_v58  ;;  %1985 = vtanh.f32 %v408_v35  ;;  %v283_v21 = vpop.permute.xlu0 %282  ;;  %v207_v24 = vadd.f32 %v2371_v6, %v45_v17 }
 0x113   :  { %v1968_v28 = vpop.eup %1967  ;;  %505 = vadd.xlane.f32.xlu1 %v472_v22  ;;  %v473_v45 = vmul.f32 %v1966_v38, %v2439_v58  ;;  %1987 = vtanh.f32 %v422_v63  ;;  %v379_v22 = vmul.f32 %v2366_v2, %v275_v30  ;;  %v424_v38 = vadd.f32 %v392_v36, %v220_v37 }
 0x114   :  { %503 = vadd.xlane.f32.xlu0 %v471_v27  ;;  %v1970_v51 = vpop.eup %1969  ;;  %v487_v52 = vmul.f32 %v1968_v28, %v2439_v58  ;;  %1989 = vtanh.f32 %v409_v10  ;;  %v221_v27 = vadd.f32 %v2380_v11, %v59_v7  ;;  %v381_v35 = vmul.f32 %v2366_v2, %v283_v21 }
 0x115   :  { %v1972_v54 = vpop.eup %1971  ;;  %v474_v61 = vmul.f32 %v1970_v51, %v2439_v58  ;;  %1991 = vtanh.f32 %v423_v16  ;;  %v411_v43 = vadd.f32 %v379_v22, %v207_v24  ;;  %v222_v51 = vadd.f32 %v2380_v11, %v60_v29  ;;  %v50_v24 = vld [vmem:[%s3438_s1 + $0x78] sm:$0xff] }
 0x116   :  { %v1974_v40 = vpop.eup %1973  ;;  %v488_v1 = vmul.f32 %v1972_v54, %v2439_v58  ;;  %1993 = vtanh.f32 %v410_v23  ;;  %v287_v34 = vpop.permute.xlu0 %286  ;;  %v425_v39 = vadd.f32 %v393_v20, %v221_v27  ;;  %v61_v54 = vld [vmem:[%s3438_s1 + $0xd0] sm:$0xff]  ;;  %v398_v29 = vmul.f32 %v2366_v2, %v2355_v55 }
 0x117   :  { %507 = vadd.xlane.f32.xlu1 %v473_v45  ;;  %v1976_v5 = vpop.eup %1975  ;;  %v475_v15 = vmul.f32 %v1974_v40, %v2439_v58  ;;  %v208_v45 = vadd.f32 %v2371_v6, %v46_v4  ;;  %1995 = vtanh.f32 %v424_v38  ;;  %v426_v63 = vadd.f32 %v394_v32, %v222_v51  ;;  %v64_v4 = vld [vmem:[%s3438_s1 + $0xe8] sm:$0xff] }
 0x118   :  { %535 = vadd.xlane.f32.xlu0 %v487_v52  ;;  %v1978_v18 = vpop.eup %1977  ;;  %v489_v41 = vmul.f32 %v1976_v5, %v2439_v58  ;;  %v47_v52 = vld [vmem:[%s3438_s1 + $0x60] sm:$0xff]  ;;  %1997 = vtanh.f32 %v411_v43  ;;  %v223_v0 = vadd.f32 %v2380_v11, %v61_v54  ;;  %v396_v5 = vmul.f32 %v2366_v2, %v2351_v48 }
 0x119   :  { %v1980_v19 = vpop.eup %1979  ;;  %v476_v25 = vmul.f32 %v1978_v18, %v2439_v58  ;;  %v412_v59 = vadd.f32 %v380_v33, %v208_v45  ;;  %v209_v60 = vadd.f32 %v2371_v6, %v47_v52  ;;  %1999 = vtanh.f32 %v425_v39  ;;  %v65_v39 = vld [vmem:[%s3438_s1 + $0xf0] sm:$0xff] }
 0x11a   :  { %v1982_v42 = vpop.eup %1981  ;;  %v490_v28 = vmul.f32 %v1980_v19, %v2439_v58  ;;  %v291_v36 = vpop.permute.xlu0 %290  ;;  %v382_v9 = vmul.f32 %v2366_v2, %v287_v34  ;;  %v427_v37 = vadd.f32 %v395_v57, %v223_v0  ;;  %v397_v19 = vmul.f32 %v2366_v2, %v2353_v50 }
 0x11b   :  { %509 = vadd.xlane.f32.xlu1 %v474_v61  ;;  %v1984_v30 = vpop.eup %1983  ;;  %v477_v47 = vmul.f32 %v1982_v42, %v2439_v58  ;;  %2001 = vtanh.f32 %v412_v59  ;;  %v413_v10 = vadd.f32 %v381_v35, %v209_v60  ;;  %v383_v21 = vmul.f32 %v2366_v2, %v291_v36 }
 0x11c   :  { %537 = vadd.xlane.f32.xlu0 %v488_v1  ;;  %v1986_v44 = vpop.eup %1985  ;;  %v491_v26 = vmul.f32 %v1984_v30, %v2439_v58  ;;  %v62_v1 = vld [vmem:[%s3438_s1 + $0xd8] sm:$0xff]  ;;  %2003 = vtanh.f32 %v426_v63  ;;  %v414_v22 = vadd.f32 %v382_v9, %v210_v14  ;;  %v212_v32 = vadd.f32 %v2371_v6, %v50_v24  ;;  %v67_v14 = vld [vmem:[%s3439_s2] sm:$0x3] }
 0x11d   :  { %v1988_v49 = vpop.eup %1987  ;;  %v478_v61 = vmul.f32 %v1986_v44, %v2439_v58  ;;  %v224_v17 = vadd.f32 %v2380_v11, %v62_v1  ;;  %2005 = vtanh.f32 %v413_v10  ;;  %v226_v43 = vadd.f32 %v2380_v11, %v64_v4 }
 0x11e   :  { %v1990_v40 = vpop.eup %1989  ;;  %v492_v46 = vmul.f32 %v1988_v49, %v2439_v58  ;;  %v295_v23 = vpop.permute.xlu0 %294  ;;  %2007 = vtanh.f32 %v427_v37  ;;  %v600_v4 = vand.u32 127, %v168_v3 }
 0x11f   :  { %511 = vadd.xlane.f32.xlu1 %v475_v15  ;;  %v1992_v56 = vpop.eup %1991  ;;  %v49_v15 = vld [vmem:[%s3438_s1 + $0x70] sm:$0xff]  ;;  %v479_v16 = vmul.f32 %v1990_v40, %v2439_v58  ;;  %v428_v38 = vadd.f32 %v396_v5, %v224_v17  ;;  %v384_v33 = vmul.f32 %v2366_v2, %v295_v23  ;;  %2009 = vtanh.f32 %v414_v22 }
 0x120   :  { %539 = vadd.xlane.f32.xlu0 %v489_v41  ;;  %v1994_v48 = vpop.eup %1993  ;;  %v493_v18 = vmul.f32 %v1992_v56, %v2439_v58  ;;  %v63_v41 = vld [vmem:[%s3438_s1 + $0xe0] sm:$0xff]  ;;  %v211_v20 = vadd.f32 %v2371_v6, %v49_v15  ;;  %v399_v6 = vmul.f32 %v2366_v2, %v2361_v62  ;;  %v430_v44 = vadd.f32 %v398_v29, %v226_v43 }
 0x121   :  { %v1996_v7 = vpop.eup %1995  ;;  %v225_v27 = vadd.f32 %v2380_v11, %v63_v41  ;;  %2011 = vtanh.f32 %v428_v38  ;;  %v416_v52 = vadd.f32 %v384_v33, %v212_v32  ;;  %v2594_v15 = vrot.slane %v67_v14, %v2254_v12 }
 0x122   :  { %v1998_v50 = vpop.eup %1997  ;;  %v494_v42 = vmul.f32 %v1996_v7, %v2439_v58  ;;  %v415_v30 = vadd.f32 %v383_v21, %v211_v20  ;;  %v605_v29 = vadd.s32 4294967288, %v600_v4  ;;  %v612_v32 = vadd.s32 4294967280, %v600_v4 }
 0x123   :  { %513 = vadd.xlane.f32.xlu1 %v476_v25  ;;  %v480_v25 = vmul.f32 %v1994_v48, %v2439_v58  ;;  %v481_v45 = vmul.f32 %v1998_v50, %v2439_v58  ;;  %v429_v34 = vadd.f32 %v397_v19, %v225_v27  ;;  %v619_v43 = vadd.s32 4294967272, %v600_v4 }
 0x124   :  { %541 = vadd.xlane.f32.xlu0 %v490_v28  ;;  %v2000_v28 = vpop.eup %1999  ;;  %2013 = vtanh.f32 %v415_v30  ;;  %v640_v3 = vadd.s32 4294967248, %v600_v4 }
 0x125   :  { %v495_v55 = vmul.f32 %v2000_v28, %v2439_v58  ;;  %2015 = vtanh.f32 %v429_v34  ;;  %v2657_v34 = vsub.s32 %v605_v29, %v2245_v8 }
 0x126   :  { %2017 = vtanh.f32 %v416_v52  ;;  %v654_v52 = vadd.s32 4294967232, %v600_v4 }
 0x127   :  { %515 = vadd.xlane.f32.xlu1 %v477_v47  ;;  %v2002_v47 = vpop.eup %2001  ;;  %2019 = vtanh.f32 %v430_v44  ;;  %3496 = vst [vmem:[#allocation10_spill] sm:$0xff] %v2657_v34  ;;  %v661_v44 = vadd.s32 4294967224, %v600_v4 }
 0x128   :  { %543 = vadd.xlane.f32.xlu0 %v491_v26  ;;  %v2004_v51 = vpop.eup %2003  ;;  %v227_v26 = vadd.f32 %v2380_v11, %v65_v39  ;;  %v482_v54 = vmul.f32 %v2002_v47, %v2439_v58  ;;  %v2660_v47 = vsub.s32 %v600_v4, %v2245_v8  ;;  %v633_v39 = vadd.s32 4294967256, %v600_v4 }
 0x129   :  { %v2006_v49 = vpop.eup %2005  ;;  %v496_v57 = vmul.f32 %v2004_v51, %v2439_v58 }
 0x12a   :  { %v2008_v35 = vpop.eup %2007  ;;  %v431_v59 = vadd.f32 %v399_v6, %v227_v26  ;;  %v483_v60 = vmul.f32 %v2006_v49, %v2439_v58  ;;  %v2665_v6 = vsub.s32 %v612_v32, %v2245_v8 }
 0x12b   :  { %517 = vadd.xlane.f32.xlu1 %v478_v61  ;;  %v2010_v62 = vpop.eup %2009  ;;  %v497_v2 = vmul.f32 %v2008_v35, %v2439_v58  ;;  %v2676_v35 = vsub.s32 %v633_v39, %v2245_v8 }
 0x12c   :  { %545 = vadd.xlane.f32.xlu0 %v492_v46  ;;  %v2012_v61 = vpop.eup %2011  ;;  %2021 = vtanh.f32 %v431_v59  ;;  %v484_v11 = vmul.f32 %v2010_v62, %v2439_v58  ;;  %3497 = vst [vmem:[#allocation11_spill] sm:$0xff] %v2665_v6  ;;  %v675_v59 = vadd.s32 4294967208, %v600_v4  ;;  %v2679_v62 = vsub.s32 %v640_v3, %v2245_v8 }
 0x12d   :  { %v498_v0 = vmul.f32 %v2012_v61, %v2439_v58  ;;  %3500 = vst [vmem:[#allocation14_spill] sm:$0xff] %v2676_v35  ;;  %v689_v61 = vadd.s32 4294967192, %v600_v4 }
 0x12e   :  { %v2014_v63 = vpop.eup %2013  ;;  %3501 = vst [vmem:[#allocation15_spill] sm:$0xff] %v2679_v62 }
 0x12f   :  { %519 = vadd.xlane.f32.xlu1 %v479_v16  ;;  %v2016_v53 = vpop.eup %2015  ;;  %v485_v40 = vmul.f32 %v2014_v63, %v2439_v58  ;;  %v974_v16 = vrot.slane %v67_v14, %v2257_v13  ;;  %v2688_v63 = vsub.s32 %v661_v44, %v2245_v8  ;;  %v2708_v14 = vsub.s32 %v675_v59, %v2245_v8 }
 0x130   :  { %547 = vadd.xlane.f32.xlu0 %v493_v18  ;;  %v2018_v46 = vpop.eup %2017  ;;  %v499_v1 = vmul.f32 %v2016_v53, %v2439_v58 }
 0x131   :  { %v2020_v56 = vpop.eup %2019  ;;  %v486_v5 = vmul.f32 %v2018_v46, %v2439_v58  ;;  %3504 = vst [vmem:[#allocation18_spill] sm:$0xff] %v2688_v63  ;;  %v703_v46 = vadd.s32 4294967176, %v600_v4  ;;  %3506 = vst [vmem:[#allocation20_spill] sm:$0xff] %v2708_v14 }
 0x132   :  { %v500_v36 = vmul.f32 %v2020_v56, %v2439_v58 }
 0x133   :  { %521 = vadd.xlane.f32.xlu1 %v480_v25 }
 0x134   :  { %549 = vadd.xlane.f32.xlu0 %v494_v42 }
 0x136   :  { %v2022_v9 = vpop.eup %2021 }
 0x137   :  { %523 = vadd.xlane.f32.xlu1 %v481_v45  ;;  %v501_v10 = vmul.f32 %v2022_v9, %v2439_v58  ;;  %v626_v45 = vadd.s32 4294967264, %v600_v4 }
 0x138   :  { %551 = vadd.xlane.f32.xlu0 %v495_v55  ;;  %v647_v55 = vadd.s32 4294967240, %v600_v4 }
 0x139   :  { %v2673_v49 = vsub.s32 %v626_v45, %v2245_v8 }
 0x13b   :  { %525 = vadd.xlane.f32.xlu1 %v482_v54  ;;  %v2670_v54 = vsub.s32 %v619_v43, %v2245_v8  ;;  %3499 = vst [vmem:[#allocation13_spill] sm:$0xff] %v2673_v49  ;;  %v2720_v43 = vsub.s32 %v689_v61, %v2245_v8 }
 0x13c   :  { %553 = vadd.xlane.f32.xlu0 %v496_v57  ;;  %v668_v57 = vadd.s32 4294967216, %v600_v4 }
 0x13d   :  { %3498 = vst [vmem:[#allocation12_spill] sm:$0xff] %v2670_v54  ;;  %3508 = vst [vmem:[#allocation22_spill] sm:$0xff] %v2720_v43 }
 0x13f   :  { %527 = vadd.xlane.f32.xlu1 %v483_v60  ;;  %v682_v60 = vadd.s32 4294967200, %v600_v4 }
 0x140   :  { %555 = vadd.xlane.f32.xlu0 %v497_v2  ;;  %v2682_v2 = vsub.s32 %v647_v55, %v2245_v8 }
 0x142   :  { %3502 = vst [vmem:[#allocation16_spill] sm:$0xff] %v2682_v2 }
 0x143   :  { %529 = vadd.xlane.f32.xlu1 %v484_v11  ;;  %v2685_v11 = vsub.s32 %v654_v52, %v2245_v8  ;;  %v2732_v52 = vsub.s32 %v703_v46, %v2245_v8 }
 0x144   :  { %557 = vadd.xlane.f32.xlu0 %v498_v0 }
 0x145   :  { %3503 = vst [vmem:[#allocation17_spill] sm:$0xff] %v2685_v11  ;;  %3510 = vst [vmem:[#allocation24_spill] sm:$0xff] %v2732_v52 }
 0x147   :  { %531 = vadd.xlane.f32.xlu1 %v485_v40  ;;  %v696_v40 = vadd.s32 4294967184, %v600_v4 }
 0x148   :  { %559 = vadd.xlane.f32.xlu0 %v499_v1 }
 0x149   :  { %v2727_v3 = vsub.s32 %v696_v40, %v2245_v8 }
 0x14b   :  { %533 = vadd.xlane.f32.xlu1 %v486_v5  ;;  %3509 = vst [vmem:[#allocation23_spill] sm:$0xff] %v2727_v3 }
 0x14c   :  { %561 = vadd.xlane.f32.xlu0 %v500_v36  ;;  %v2701_v36 = vsub.s32 %v668_v57, %v2245_v8 }
 0x14e   :  { %3505 = vst [vmem:[#allocation19_spill] sm:$0xff] %v2701_v36 }
 0x150   :  { %563 = vadd.xlane.f32.xlu0 %v501_v10 }
 0x154   :  { %565 = vadd.xlane.f32.xlu0 %v2461_v31 }
 0x15c   :  { %913 = vbcast.lane.b32.xlu1 %v2594_v15, 264 }
 0x160   :  { %917 = vbcast.lane.b32.xlu1 %v2594_v15, 272 }
 0x164   :  { %925 = vbcast.lane.b32.xlu1 %v2594_v15, 288 }
 0x168   :  { %976 = vbcast.lane.b32.xlu1 %v974_v16, 256 }
 0x16a   :  { %909 = vbcast.lane.b32.xlu0 %v2594_v15, 256 }
 0x16c   :  { %984 = vbcast.lane.b32.xlu1 %v974_v16, 272 }
 0x16e   :  { %921 = vbcast.lane.b32.xlu0 %v2594_v15, 280 }
 0x170   :  { %992 = vbcast.lane.b32.xlu1 %v974_v16, 288 }
 0x172   :  { %929 = vbcast.lane.b32.xlu0 %v2594_v15, 296 }
 0x174   :  { %933 = vbcast.lane.b32.xlu1 %v2594_v15, 304 }
 0x176   :  { %980 = vbcast.lane.b32.xlu0 %v974_v16, 264 }
 0x178   :  { %937 = vbcast.lane.b32.xlu1 %v2594_v15, 312 }
 0x17a   :  { %988 = vbcast.lane.b32.xlu0 %v974_v16, 280 }
 0x17c   :  { %941 = vbcast.lane.b32.xlu1 %v2594_v15, 320 }
 0x17e   :  { %996 = vbcast.lane.b32.xlu0 %v974_v16, 296 }
 0x180   :  { %945 = vbcast.lane.b32.xlu1 %v2594_v15, 328 }
 0x182   :  { %1000 = vbcast.lane.b32.xlu0 %v974_v16, 304 }
 0x184   :  { %949 = vbcast.lane.b32.xlu1 %v2594_v15, 336 }
 0x186   :  { %1004 = vbcast.lane.b32.xlu0 %v974_v16, 312 }
 0x188   :  { %953 = vbcast.lane.b32.xlu1 %v2594_v15, 344 }
 0x18a   :  { %1008 = vbcast.lane.b32.xlu0 %v974_v16, 320 }
 0x18c   :  { %957 = vbcast.lane.b32.xlu1 %v2594_v15, 352 }
 0x18e   :  { %1012 = vbcast.lane.b32.xlu0 %v974_v16, 328 }
 0x190   :  { %961 = vbcast.lane.b32.xlu1 %v2594_v15, 360 }
 0x192   :  { %1016 = vbcast.lane.b32.xlu0 %v974_v16, 336 }
 0x196   :  { %1020 = vbcast.lane.b32.xlu0 %v974_v16, 344 }
 0x19a   :  { %1024 = vbcast.lane.b32.xlu0 %v974_v16, 352 }
 0x19e   :  { %1028 = vbcast.lane.b32.xlu0 %v974_v16, 360 }
 0x1a0   :  { %v2611_v58 = vpop.xlane.xlu1 %505 }
 0x1a1   :  { %v2613_v31 = vpop.xlane.xlu0 %503  ;;  %v609_v1 = vrot.slane %v2611_v58, %v2657_v34 }
 0x1a2   :  { %1032 = vbcast.lane.b32.xlu0 %v974_v16, 368  ;;  %v604_v56 = vrot.slane %v2613_v31, %v2660_v47 }
 0x1a4   :  { %v2615_v37 = vpop.xlane.xlu1 %507  ;;  %v611_v44 = vsel %vm610_vm1, %v609_v1, %v604_v56 }
 0x1a5   :  { %v2617_v17 = vpop.xlane.xlu0 %535  ;;  %v616_v9 = vrot.slane %v2615_v37, %v2665_v6 }
 0x1a6   :  { %1036 = vbcast.lane.b32.xlu0 %v974_v16, 376  ;;  %v2711_v16 = vsub.s32 %v682_v60, %v2245_v8  ;;  %v713_v4 = vrot.slane %v2617_v17, %v2660_v47 }
 0x1a7   :  { %v618_v61 = vsel %vm617_vm2, %v616_v9, %v611_v44 }
 0x1a8   :  { %v2619_v48 = vpop.xlane.xlu1 %509  ;;  %3507 = vst [vmem:[#allocation21_spill] sm:$0xff] %v2711_v16 }
 0x1a9   :  { %v2621_v18 = vpop.xlane.xlu0 %537  ;;  %v623_v29 = vrot.slane %v2619_v48, %v2670_v54 }
 0x1aa   :  { %v717_v5 = vrot.slane %v2621_v18, %v2657_v34 }
 0x1ab   :  { %v625_v1 = vsel %vm624_vm3, %v623_v29, %v618_v61 }
 0x1ac   :  { %v2623_v41 = vpop.xlane.xlu1 %511  ;;  %v718_v57 = vsel %vm610_vm1, %v717_v5, %v713_v4 }
 0x1ad   :  { %v2625_v7 = vpop.xlane.xlu0 %539  ;;  %v630_v45 = vrot.slane %v2623_v41, %v2673_v49 }
 0x1ae   :  { %v722_v10 = vrot.slane %v2625_v7, %v2665_v6 }
 0x1b0   :  { %v2627_v19 = vpop.xlane.xlu1 %513  ;;  %v723_v40 = vsel %vm617_vm2, %v722_v10, %v718_v57  ;;  %v632_v10 = vsel %vm631_vm4, %v630_v45, %v625_v1 }
 0x1b1   :  { %v2629_v20 = vpop.xlane.xlu0 %541  ;;  %v637_v59 = vrot.slane %v2627_v19, %v2676_v35 }
 0x1b2   :  { %v727_v32 = vrot.slane %v2629_v20, %v2670_v54 }
 0x1b3   :  { %v639_v29 = vsel %vm638_vm5, %v637_v59, %v632_v10 }
 0x1b4   :  { %v2631_v21 = vpop.xlane.xlu1 %515  ;;  %v728_v56 = vsel %vm624_vm3, %v727_v32, %v723_v40 }
 0x1b5   :  { %v2633_v22 = vpop.xlane.xlu0 %543 }
 0x1b6   :  { %v732_v39 = vrot.slane %v2633_v22, %v2673_v49  ;;  %v644_v49 = vrot.slane %v2631_v21, %v2679_v62 }
 0x1b8   :  { %v2635_v23 = vpop.xlane.xlu1 %517  ;;  %v733_v4 = vsel %vm631_vm4, %v732_v39, %v728_v56  ;;  %v646_v39 = vsel %vm645_vm6, %v644_v49, %v639_v29 }
 0x1b9   :  { %v2637_v24 = vpop.xlane.xlu0 %545  ;;  %v651_v5 = vrot.slane %v2635_v23, %v2682_v2 }
 0x1ba   :  { %v737_v60 = vrot.slane %v2637_v24, %v2676_v35 }
 0x1bb   :  { %v653_v59 = vsel %vm3493_vm7, %v651_v5, %v646_v39 }
 0x1bc   :  { %v2639_v25 = vpop.xlane.xlu1 %519  ;;  %v738_v32 = vsel %vm638_vm5, %v737_v60, %v733_v4 }
 0x1bd   :  { %v2641_v38 = vpop.xlane.xlu0 %547  ;;  %v658_v44 = vrot.slane %v2639_v25, %v2685_v11 }
 0x1be   :  { %v742_v8 = vrot.slane %v2641_v38, %v2679_v62 }
 0x1bf   :  { %v660_v49 = vsel %vm3492_vm8, %v658_v44, %v653_v59 }
 0x1c0   :  { %v2643_v27 = vpop.xlane.xlu1 %521  ;;  %v743_v40 = vsel %vm645_vm6, %v742_v8, %v738_v32 }
 0x1c1   :  { %v2645_v50 = vpop.xlane.xlu0 %549  ;;  %v665_v61 = vrot.slane %v2643_v27, %v2688_v63 }
 0x1c2   :  { %v747_v9 = vrot.slane %v2645_v50, %v2682_v2 }
 0x1c4   :  { %v2648_v42 = vpop.xlane.xlu1 %523  ;;  %v748_v60 = vsel %vm3493_vm7, %v747_v9, %v743_v40  ;;  %v667_v9 = vsel %vm666_vm9, %v665_v61, %v660_v49 }
 0x1c5   :  { %v2650_v28 = vpop.xlane.xlu0 %551  ;;  %v672_v1 = vrot.slane %v2648_v42, %v2701_v36 }
 0x1c6   :  { %v752_v57 = vrot.slane %v2650_v28, %v2685_v11 }
 0x1c8   :  { %v2652_v30 = vpop.xlane.xlu1 %525  ;;  %v753_v8 = vsel %vm3492_vm8, %v752_v57, %v748_v60  ;;  %v674_v57 = vsel %vm673_vm10, %v672_v1, %v667_v9 }
 0x1c9   :  { %v2654_v33 = vpop.xlane.xlu0 %553  ;;  %v679_v10 = vrot.slane %v2652_v30, %v2708_v14 }
 0x1ca   :  { %v757_v45 = vrot.slane %v2654_v33, %v2688_v63 }
 0x1cb   :  { %v681_v61 = vsel %vm3456_vm11, %v679_v10, %v674_v57 }
 0x1cc   :  { %v2662_v51 = vpop.xlane.xlu1 %527  ;;  %v758_v39 = vsel %vm666_vm9, %v757_v45, %v753_v8 }
 0x1cd   :  { %v2667_v26 = vpop.xlane.xlu0 %555  ;;  %v686_v29 = vrot.slane %v2662_v51, %v2711_v16 }
 0x1ce   :  { %v762_v56 = vrot.slane %v2667_v26, %v2701_v36 }
 0x1cf   :  { %v688_v8 = vsel %vm687_vm12, %v686_v29, %v681_v61 }
 0x1d0   :  { %v2690_v0 = vpop.xlane.xlu1 %529  ;;  %v763_v59 = vsel %vm673_vm10, %v762_v56, %v758_v39 }
 0x1d1   :  { %v2692_v53 = vpop.xlane.xlu0 %557  ;;  %v693_v40 = vrot.slane %v2690_v0, %v2720_v43 }
 0x1d2   :  { %v767_v4 = vrot.slane %v2692_v53, %v2708_v14 }
 0x1d3   :  { %v695_v56 = vsel %vm694_vm13, %v693_v40, %v688_v8  ;;  %v2174_v40 = vmov 0  }
 0x1d4   :  { %v2746_v46 = vpop.xlane.xlu1 %531  ;;  %v768_v45 = vsel %vm3456_vm11, %v767_v4, %v763_v59  ;;  %vm792_vm11 = vcmask 1041408   ;;  %1958 = vset.pattern.permute.xlu0 %v2174_v40  ;;  %1957 = vset.pattern.permute.xlu1 %v2174_v40 }
 0x1d5   :  { %v2729_v55 = vpop.xlane.xlu0 %559  ;;  %v700_v60 = vrot.slane %v2746_v46, %v2727_v3 }
 0x1d6   :  { %v772_v32 = vrot.slane %v2729_v55, %v2711_v16 }
 0x1d7   :  { %v702_v4 = vsel %vm701_vm14, %v700_v60, %v695_v56 }
 0x1d8   :  { %v2786_v36 = vpop.xlane.xlu1 %533  ;;  %v773_v1 = vsel %vm687_vm12, %v772_v32, %v768_v45 }
 0x1d9   :  { %v2760_v62 = vpop.xlane.xlu0 %561  ;;  %v707_v49 = vrot.slane %v2786_v36, %v2732_v52 }
 0x1da   :  { %v777_v44 = vrot.slane %v2760_v62, %v2720_v43 }
 0x1db   :  { %v709_v29 = vsel %vm708_vm15, %v707_v49, %v702_v4 }
 0x1dc   :  { %v778_v39 = vsel %vm694_vm13, %v777_v44, %v773_v1  ;;  %v914_v44 = vpop.permute.xlu1 %913 }
 0x1dd   :  { %v2788_v5 = vpop.xlane.xlu0 %563 }
 0x1de   :  { %v782_v16 = vrot.slane %v2788_v5, %v2727_v3 }
 0x1e0   :  { %v783_v57 = vsel %vm701_vm14, %v782_v16, %v778_v39  ;;  %v2822_v60 = vpop.permute.xlu1 %917 }
 0x1e1   :  { %v2808_v9 = vpop.xlane.xlu0 %565 }
 0x1e2   :  { %v787_v10 = vrot.slane %v2808_v9, %v2732_v52 }
 0x1e4   :  { %v788_v32 = vsel %vm708_vm15, %v787_v10, %v783_v57  ;;  %v2824_v16 = vpop.permute.xlu1 %925 }
 0x1e5   :  { %v790_v59 = vsel %vm789_vm0, %v788_v32, %v709_v29  ;;  %v910_v32 = vpop.permute.xlu0 %909 }
 0x1e6   :  { %v793_v61 = vsel %vm792_vm11, %v790_v59, -inf }
 0x1e7   :  { %794 = vmax.xlane.f32.xlu1 %v793_v61 }
 0x1e8   :  { %v2826_v45 = vpop.permute.xlu1 %976 }
 0x1e9   :  { %v922_v40 = vpop.permute.xlu0 %921 }
 0x1ec   :  { %v2828_v49 = vpop.permute.xlu1 %984 }
 0x1ed   :  { %v2860_v63 = vpop.permute.xlu0 %929 }
 0x1f0   :  { %v2830_v8 = vpop.permute.xlu1 %992 }
 0x1f4   :  { %v2832_v1 = vpop.permute.xlu1 %933 }
 0x1f8   :  { %965 = vbcast.lane.b32.xlu1 %v2594_v15, 368  ;;  %v2834_v56 = vpop.permute.xlu1 %937 }
 0x1fc   :  { %969 = vbcast.lane.b32.xlu1 %v2594_v15, 376  ;;  %v2836_v39 = vpop.permute.xlu1 %941 }
 0x200   :  { %v2838_v15 = vpop.permute.xlu1 %945 }
 0x204   :  { %v2840_v10 = vpop.permute.xlu1 %949 }
 0x208   :  { %v2842_v4 = vpop.permute.xlu1 %953 }
 0x20c   :  { %v2844_v57 = vpop.permute.xlu1 %957 }
 0x210   :  { %v2846_v29 = vpop.permute.xlu1 %961 }
 0x274   :  { %v795_v59 = vpop.xlane.xlu1 %794 }
 0x275   :  { %v2849_v61 = vrot.slane %v795_v59, %v2254_v12  ;;  %v2852_v52 = vrot.slane %v795_v59, %v2257_v13 }
 0x277   :  { %v808_v3 = vsub.f32 %v2611_v58, %v2849_v61  ;;  %v807_v43 = vsub.f32 %v2613_v31, %v2849_v61  ;;  %v809_v14 = vsub.f32 %v2615_v37, %v2849_v61  ;;  %v823_v11 = vsub.f32 %v2617_v17, %v2852_v52  ;;  %v981_v31 = vpop.permute.xlu0 %980 }
 0x278   :  { %v810_v59 = vsub.f32 %v2619_v48, %v2849_v61  ;;  %v824_v58 = vsub.f32 %v2621_v18, %v2852_v52  ;;  %v811_v54 = vsub.f32 %v2623_v41, %v2849_v61  ;;  %v812_v48 = vsub.f32 %v2627_v19, %v2849_v61 }
 0x279   :  { %v841_v12 = vmul.f32 1.442695, %v808_v3  ;;  %v839_v2 = vmul.f32 1.442695, %v807_v43  ;;  %v843_v35 = vmul.f32 1.442695, %v809_v14  ;;  %v825_v14 = vsub.f32 %v2625_v7, %v2852_v52 }
 0x27a   :  { %v871_v13 = vmul.f32 1.442695, %v823_v11  ;;  %v845_v37 = vmul.f32 1.442695, %v810_v59  ;;  %v873_v17 = vmul.f32 1.442695, %v824_v58  ;;  %v826_v18 = vsub.f32 %v2629_v20, %v2852_v52 }
 0x27b   :  { %2023 = vpow2.f32 %v841_v12  ;;  %v847_v43 = vmul.f32 1.442695, %v811_v54  ;;  %v2874_v11 = vpop.permute.xlu0 %988  ;;  %v875_v12 = vmul.f32 1.442695, %v825_v14  ;;  %v849_v41 = vmul.f32 1.442695, %v812_v48 }
 0x27c   :  { %2025 = vpow2.f32 %v839_v2  ;;  %v877_v54 = vmul.f32 1.442695, %v826_v18  ;;  %v827_v19 = vsub.f32 %v2633_v22, %v2852_v52 }
 0x27d   :  { %2027 = vpow2.f32 %v843_v35 }
 0x27e   :  { %2029 = vpow2.f32 %v871_v13  ;;  %v813_v13 = vsub.f32 %v2631_v21, %v2849_v61  ;;  %v814_v21 = vsub.f32 %v2635_v23, %v2849_v61  ;;  %v879_v22 = vmul.f32 1.442695, %v827_v19 }
 0x27f   :  { %2031 = vpow2.f32 %v845_v37  ;;  %v2886_v37 = vpop.permute.xlu0 %996  ;;  %v815_v23 = vsub.f32 %v2639_v25, %v2849_v61  ;;  %v816_v25 = vsub.f32 %v2643_v27, %v2849_v61 }
 0x280   :  { %2033 = vpow2.f32 %v873_v17  ;;  %v851_v20 = vmul.f32 1.442695, %v813_v13  ;;  %v853_v48 = vmul.f32 1.442695, %v814_v21 }
 0x281   :  { %2035 = vpow2.f32 %v847_v43  ;;  %v855_v13 = vmul.f32 1.442695, %v815_v23  ;;  %v857_v27 = vmul.f32 1.442695, %v816_v25  ;;  %v834_v25 = vsub.f32 %v2692_v53, %v2852_v52 }
 0x282   :  { %2037 = vpow2.f32 %v875_v12 }
 0x283   :  { %2039 = vpow2.f32 %v849_v41 }
 0x284   :  { %2041 = vpow2.f32 %v877_v54 }
 0x285   :  { %v2024_v35 = vpop.eup %2023  ;;  %2043 = vpow2.f32 %v851_v20 }
 0x286   :  { %v2026_v2 = vpop.eup %2025  ;;  %v2880_v7 = vmul.f32 %v2024_v35, %v914_v44  ;;  %2045 = vpow2.f32 %v879_v22 }
 0x287   :  { %v2028_v3 = vpop.eup %2027  ;;  %v2884_v59 = vmul.f32 %v2026_v2, %v910_v32  ;;  %v828_v32 = vsub.f32 %v2637_v24, %v2852_v52  ;;  %2047 = vpow2.f32 %v853_v48 }
 0x288   :  { %v2030_v58 = vpop.eup %2029  ;;  %1138 = vperm.xlu0 %1958, %v2880_v7   ;;  %v2893_v44 = vmul.f32 %v2028_v3, %v2822_v60  ;;  %v2904_v60 = vpop.permute.xlu0 %1000 }
 0x289   :  { %1135 = vperm.xlu1 %1957, %v2884_v59   ;;  %v2032_v17 = vpop.eup %2031  ;;  %v2898_v14 = vmul.f32 %v2030_v58, %v2826_v45  ;;  %v881_v24 = vmul.f32 1.442695, %v828_v32  ;;  %v829_v45 = vsub.f32 %v2641_v38, %v2852_v52  ;;  %v830_v38 = vsub.f32 %v2645_v50, %v2852_v52 }
 0x28a   :  { %v2034_v43 = vpop.eup %2033  ;;  %v2906_v12 = vmul.f32 %v2032_v17, %v922_v40 }
 0x28b   :  { %v2036_v18 = vpop.eup %2035  ;;  %v2910_v35 = vmul.f32 %v2034_v43, %v981_v31  ;;  %2049 = vpow2.f32 %v881_v24  ;;  %v883_v2 = vmul.f32 1.442695, %v829_v45  ;;  %v885_v50 = vmul.f32 1.442695, %v830_v38 }
 0x28c   :  { %1141 = vperm.xlu0 %1958, %v2893_v44   ;;  %v2038_v41 = vpop.eup %2037  ;;  %v2917_v40 = vmul.f32 %v2036_v18, %v2824_v16  ;;  %v1005_v3 = vpop.permute.xlu0 %1004  ;;  %2051 = vpow2.f32 %v855_v13  ;;  %v817_v16 = vsub.f32 %v2648_v42, %v2849_v61  ;;  %v818_v42 = vsub.f32 %v2652_v30, %v2849_v61 }
 0x28d   :  { %1183 = vperm.xlu1 %1957, %v2898_v14   ;;  %v2040_v31 = vpop.eup %2039  ;;  %v2922_v54 = vmul.f32 %v2038_v41, %v2828_v49  ;;  %2053 = vpow2.f32 %v883_v2  ;;  %v831_v49 = vsub.f32 %v2650_v28, %v2852_v52 }
 0x28e   :  { %v2042_v19 = vpop.eup %2041  ;;  %v2929_v58 = vmul.f32 %v2040_v31, %v2860_v63  ;;  %2055 = vpow2.f32 %v857_v27  ;;  %v859_v32 = vmul.f32 1.442695, %v817_v16  ;;  %v861_v30 = vmul.f32 1.442695, %v818_v42 }
 0x28f   :  { %v2044_v20 = vpop.eup %2043  ;;  %v2934_v21 = vmul.f32 %v2042_v19, %v2874_v11  ;;  %2057 = vpow2.f32 %v885_v50  ;;  %v887_v28 = vmul.f32 1.442695, %v831_v49  ;;  %v832_v11 = vsub.f32 %v2654_v33, %v2852_v52 }
 0x290   :  { %1144 = vperm.xlu0 %1958, %v2906_v12   ;;  %v2046_v22 = vpop.eup %2045  ;;  %v1009_v63 = vpop.permute.xlu0 %1008  ;;  %v2941_v17 = vmul.f32 %v2044_v20, %v2832_v1  ;;  %2059 = vpow2.f32 %v859_v32  ;;  %v819_v1 = vsub.f32 %v2662_v51, %v2849_v61  ;;  %v833_v33 = vsub.f32 %v2667_v26, %v2852_v52 }
 0x291   :  { %1186 = vperm.xlu1 %1957, %v2910_v35   ;;  %v2048_v43 = vpop.eup %2047  ;;  %v2946_v48 = vmul.f32 %v2046_v22, %v2830_v8  ;;  %2061 = vpow2.f32 %v887_v28  ;;  %v889_v45 = vmul.f32 1.442695, %v832_v11  ;;  %v821_v19 = vsub.f32 %v2746_v46, %v2849_v61 }
 0x292   :  { %v2953_v24 = vmul.f32 %v2048_v43, %v2834_v56  ;;  %2063 = vpow2.f32 %v861_v30  ;;  %v863_v51 = vmul.f32 1.442695, %v819_v1  ;;  %v820_v56 = vsub.f32 %v2690_v0, %v2849_v61 }
 0x293   :  { %2065 = vpow2.f32 %v889_v45  ;;  %v893_v27 = vmul.f32 1.442695, %v834_v25  ;;  %v867_v46 = vmul.f32 1.442695, %v821_v19  ;;  %v822_v20 = vsub.f32 %v2786_v36, %v2849_v61 }
 0x294   :  { %1147 = vperm.xlu0 %1958, %v2917_v40   ;;  %3511 = vst [vmem:[#allocation25_spill] sm:$0xff] %v2953_v24  ;;  %v1013_v13 = vpop.permute.xlu0 %1012  ;;  %2067 = vpow2.f32 %v863_v51  ;;  %v865_v0 = vmul.f32 1.442695, %v820_v56  ;;  %v837_v11 = vsub.f32 %v2788_v5, %v2852_v52  ;;  %v838_v1 = vsub.f32 %v2808_v9, %v2852_v52 }
 0x295   :  { %1189 = vperm.xlu1 %1957, %v2922_v54   ;;  %v2050_v23 = vpop.eup %2049  ;;  %v869_v36 = vmul.f32 1.442695, %v822_v20 }
 0x296   :  { %v2052_v8 = vpop.eup %2051  ;;  %v2958_v18 = vmul.f32 %v2050_v23, %v2886_v37  ;;  %v891_v37 = vmul.f32 1.442695, %v833_v33  ;;  %v899_v30 = vmul.f32 1.442695, %v837_v11 }
 0x297   :  { %v2054_v41 = vpop.eup %2053  ;;  %v2967_v26 = vmul.f32 %v2052_v8, %v2836_v39  ;;  %v835_v39 = vsub.f32 %v2729_v55, %v2852_v52  ;;  %v836_v55 = vsub.f32 %v2760_v62, %v2852_v52  ;;  %v966_v8 = vpop.permute.xlu1 %965 }
 0x298   :  { %1150 = vperm.xlu0 %1958, %v2929_v58   ;;  %v2056_v2 = vpop.eup %2055  ;;  %v2970_v38 = vmul.f32 %v2054_v41, %v2904_v60  ;;  %v1017_v53 = vpop.permute.xlu0 %1016  ;;  %2069 = vpow2.f32 %v891_v37  ;;  %v901_v41 = vmul.f32 1.442695, %v838_v1 }
 0x299   :  { %1192 = vperm.xlu1 %1957, %v2934_v21   ;;  %3512 = vst [vmem:[#allocation26_spill] sm:$0xff] %v2967_v26  ;;  %v2058_v31 = vpop.eup %2057  ;;  %v2979_v16 = vmul.f32 %v2056_v2, %v2838_v15  ;;  %2071 = vpow2.f32 %v865_v0  ;;  %v895_v22 = vmul.f32 1.442695, %v835_v39  ;;  %v897_v61 = vmul.f32 1.442695, %v836_v55 }
 0x29a   :  { %3513 = vst [vmem:[#allocation27_spill] sm:$0xff] %v2970_v38  ;;  %v2060_v60 = vpop.eup %2059  ;;  %v2981_v50 = vmul.f32 %v2058_v31, %v1005_v3  ;;  %2073 = vpow2.f32 %v893_v27 }
 0x29b   :  { %3514 = vst [vmem:[#allocation28_spill] sm:$0xff] %v2979_v16  ;;  %v2062_v49 = vpop.eup %2061  ;;  %v2990_v15 = vmul.f32 %v2060_v60, %v2840_v10  ;;  %2075 = vpow2.f32 %v867_v46  ;;  %v970_v2 = vpop.permute.xlu1 %969 }
 0x29c   :  { %1153 = vperm.xlu0 %1958, %v2941_v17   ;;  %v2064_v3 = vpop.eup %2063  ;;  %v2992_v32 = vmul.f32 %v2062_v49, %v1009_v63  ;;  %v1021_v28 = vpop.permute.xlu0 %1020  ;;  %2077 = vpow2.f32 %v895_v22 }
 0x29d   :  { %1195 = vperm.xlu1 %1957, %v2946_v48   ;;  %3515 = vst [vmem:[#allocation29_spill] sm:$0xff] %v2990_v15  ;;  %v2066_v42 = vpop.eup %2065  ;;  %v2999_v62 = vmul.f32 %v2064_v3, %v2842_v4  ;;  %2079 = vpow2.f32 %v869_v36 }
 0x29e   :  { %v2068_v10 = vpop.eup %2067  ;;  %v3001_v43 = vmul.f32 %v2066_v42, %v1013_v13  ;;  %2081 = vpow2.f32 %v897_v61 }
 0x29f   :  { %3516 = vst [vmem:[#allocation30_spill] sm:$0xff] %v2999_v62  ;;  %v3008_v5 = vmul.f32 %v2068_v10, %v2844_v57  ;;  %2083 = vpow2.f32 %v899_v30 }
 0x2a0   :  { %1156 = vperm.xlu0 %1958, %v2953_v24   ;;  %v1025_v23 = vpop.permute.xlu0 %1024  ;;  %2085 = vpow2.f32 %v901_v41 }
 0x2a1   :  { %1198 = vperm.xlu1 %1957, %v2958_v18   ;;  %3517 = vst [vmem:[#allocation31_spill] sm:$0xff] %v3008_v5 }
 0x2a2   :  { %v2070_v63 = vpop.eup %2069 }
 0x2a3   :  { %v2072_v4 = vpop.eup %2071  ;;  %v3010_v45 = vmul.f32 %v2070_v63, %v1017_v53 }
 0x2a4   :  { %1159 = vperm.xlu0 %1958, %v2967_v26   ;;  %v2074_v33 = vpop.eup %2073  ;;  %v3015_v13 = vmul.f32 %v2072_v4, %v2846_v29  ;;  %v1029_v9 = vpop.permute.xlu0 %1028 }
 0x2a5   :  { %1201 = vperm.xlu1 %1957, %v2970_v38   ;;  %v2076_v51 = vpop.eup %2075  ;;  %v3017_v56 = vmul.f32 %v2074_v33, %v1021_v28 }
 0x2a6   :  { %3518 = vst [vmem:[#allocation32_spill] sm:$0xff] %v3015_v13  ;;  %v2078_v52 = vpop.eup %2077  ;;  %v3021_v57 = vmul.f32 %v2076_v51, %v966_v8 }
 0x2a7   :  { %v2080_v25 = vpop.eup %2079  ;;  %v3023_v37 = vmul.f32 %v2078_v52, %v1025_v23 }
 0x2a8   :  { %1162 = vperm.xlu0 %1958, %v2979_v16   ;;  %3519 = vst [vmem:[#allocation33_spill] sm:$0xff] %v3021_v57  ;;  %v2082_v31 = vpop.eup %2081  ;;  %v1033_v29 = vpop.permute.xlu0 %1032  ;;  %v3027_v19 = vmul.f32 %v2080_v25, %v970_v2  ;;  %v3522_v16 = vld [vmem:[#allocation13_spill] sm:$0xff] }
 0x2a9   :  { %1204 = vperm.xlu1 %1957, %v2981_v50   ;;  %v3029_v0 = vmul.f32 %v2082_v31, %v1029_v9  ;;  %v2084_v53 = vpop.eup %2083 }
 0x2aa   :  { %3520 = vst [vmem:[#allocation34_spill] sm:$0xff] %v3027_v19  ;;  %v3033_v27 = vmul.f32 %v2084_v53, %v1033_v29  ;;  %v2086_v39 = vpop.eup %2085 }
 0x2ac   :  { %1165 = vperm.xlu0 %1958, %v2990_v15   ;;  %v1037_v60 = vpop.permute.xlu0 %1036 }
 0x2ad   :  { %1207 = vperm.xlu1 %1957, %v2992_v32   ;;  %v3036_v49 = vmul.f32 %v2086_v39, %v1037_v60 }
 0x2b0   :  { %1168 = vperm.xlu0 %1958, %v2999_v62  }
 0x2b1   :  { %1210 = vperm.xlu1 %1957, %v3001_v43  }
 0x2b4   :  { %1171 = vperm.xlu0 %1958, %v3008_v5   ;;  %v3521_v5 = vld [vmem:[#allocation12_spill] sm:$0xff] }
 0x2b5   :  { %1213 = vperm.xlu1 %1957, %v3010_v45  }
 0x2b8   :  { %1174 = vperm.xlu0 %1958, %v3015_v13  }
 0x2b9   :  { %1216 = vperm.xlu1 %1957, %v3017_v56  }
 0x2bc   :  { %1177 = vperm.xlu0 %1958, %v3021_v57  }
 0x2bd   :  { %1219 = vperm.xlu1 %1957, %v3023_v37  }
 0x2c0   :  { %1180 = vperm.xlu0 %1958, %v3027_v19  }
 0x2c1   :  { %1222 = vperm.xlu1 %1957, %v3029_v0  }
 0x2c5   :  { %1225 = vperm.xlu1 %1957, %v3033_v27  }
 0x2c9   :  { %1228 = vperm.xlu1 %1957, %v3036_v49  }
 0x307   :  { %v1139_v46 = vpop.permute.xlu0 %1138 }
 0x308   :  { %v1136_v20 = vpop.permute.xlu1 %1135  ;;  %v1237_v39 = vrot.slane %v1139_v46, %v2657_v34 }
 0x309   :  { %v1233_v53 = vrot.slane %v1136_v20, %v2660_v47 }
 0x30b   :  { %v1142_v22 = vpop.permute.xlu0 %1141  ;;  %v1238_v20 = vsel %vm610_vm1, %v1237_v39, %v1233_v53  ;;  %v3525_v53 = vld [vmem:[#allocation16_spill] sm:$0xff] }
 0x30c   :  { %v1184_v55 = vpop.permute.xlu1 %1183  ;;  %v1242_v19 = vrot.slane %v1142_v22, %v2665_v6 }
 0x30d   :  { %v1312_v13 = vrot.slane %v1184_v55, %v2660_v47 }
 0x30f   :  { %v1145_v3 = vpop.permute.xlu0 %1144 }
 0x310   :  { %v1187_v42 = vpop.permute.xlu1 %1186  ;;  %v1247_v62 = vrot.slane %v1145_v3, %v3521_v5  ;;  %v3524_v3 = vld [vmem:[#allocation15_spill] sm:$0xff] }
 0x311   :  { %v1316_v60 = vrot.slane %v1187_v42, %v2657_v34  ;;  %v3523_v42 = vld [vmem:[#allocation14_spill] sm:$0xff] }
 0x313   :  { %v1148_v28 = vpop.permute.xlu0 %1147  ;;  %v1317_v46 = vsel %vm610_vm1, %v1316_v60, %v1312_v13 }
 0x314   :  { %v1190_v36 = vpop.permute.xlu1 %1189  ;;  %v1252_v26 = vrot.slane %v1148_v28, %v3522_v16 }
 0x315   :  { %v1321_v57 = vrot.slane %v1190_v36, %v2665_v6  ;;  %v1243_v36 = vsel %vm617_vm2, %v1242_v19, %v1238_v20  ;;  %v3526_v19 = vld [vmem:[#allocation17_spill] sm:$0xff] }
 0x317   :  { %v1151_v61 = vpop.permute.xlu0 %1150  ;;  %v1322_v55 = vsel %vm617_vm2, %v1321_v57, %v1317_v46 }
 0x318   :  { %v1193_v11 = vpop.permute.xlu1 %1192  ;;  %v1257_v34 = vrot.slane %v1151_v61, %v3523_v42 }
 0x319   :  { %v1326_v15 = vrot.slane %v1193_v11, %v3521_v5 }
 0x31b   :  { %v1154_v10 = vpop.permute.xlu0 %1153  ;;  %v1327_v5 = vsel %vm624_vm3, %v1326_v15, %v1322_v55 }
 0x31c   :  { %v1196_v63 = vpop.permute.xlu1 %1195  ;;  %v1262_v6 = vrot.slane %v1154_v10, %v3524_v3 }
 0x31d   :  { %v1331_v24 = vrot.slane %v1196_v63, %v3522_v16  ;;  %v1248_v63 = vsel %vm624_vm3, %v1247_v62, %v1243_v36  ;;  %v3527_v62 = vld [vmem:[#allocation18_spill] sm:$0xff] }
 0x31e   :  { %v1253_v61 = vsel %vm631_vm4, %v1252_v26, %v1248_v63  ;;  %v3528_v26 = vld [vmem:[#allocation19_spill] sm:$0xff] }
 0x31f   :  { %v1157_v23 = vpop.permute.xlu0 %1156 }
 0x320   :  { %v1199_v30 = vpop.permute.xlu1 %1198  ;;  %v1267_v39 = vrot.slane %v1157_v23, %v3525_v53 }
 0x321   :  { %v1336_v22 = vrot.slane %v1199_v30, %v3523_v42  ;;  %v1332_v30 = vsel %vm631_vm4, %v1331_v24, %v1327_v5 }
 0x323   :  { %v1160_v1 = vpop.permute.xlu0 %1159  ;;  %v1337_v20 = vsel %vm638_vm5, %v1336_v22, %v1332_v30 }
 0x324   :  { %v1202_v4 = vpop.permute.xlu1 %1201  ;;  %v1272_v60 = vrot.slane %v1160_v1, %v3526_v19 }
 0x325   :  { %v1341_v11 = vrot.slane %v1202_v4, %v3524_v3  ;;  %v1258_v4 = vsel %vm638_vm5, %v1257_v34, %v1253_v61 }
 0x326   :  { %v1263_v23 = vsel %vm645_vm6, %v1262_v6, %v1258_v4  ;;  %v3530_v6 = vld [vmem:[#allocation21_spill] sm:$0xff] }
 0x327   :  { %v1163_v33 = vpop.permute.xlu0 %1162  ;;  %v1268_v5 = vsel %vm3493_vm7, %v1267_v39, %v1263_v23 }
 0x328   :  { %v1205_v8 = vpop.permute.xlu1 %1204  ;;  %v1277_v46 = vrot.slane %v1163_v33, %v3527_v62  ;;  %v1273_v33 = vsel %vm3492_vm8, %v1272_v60, %v1268_v5  ;;  %v3532_v60 = vld [vmem:[#allocation23_spill] sm:$0xff] }
 0x329   :  { %v1346_v13 = vrot.slane %v1205_v8, %v3525_v53  ;;  %v1342_v8 = vsel %vm645_vm6, %v1341_v11, %v1337_v20  ;;  %v3535_v20 = vld [vmem:[#allocation24_spill] sm:$0xff] }
 0x32a   :  { %v1278_v63 = vsel %vm666_vm9, %v1277_v46, %v1273_v33 }
 0x32b   :  { %v1166_v41 = vpop.permute.xlu0 %1165  ;;  %v1347_v1 = vsel %vm3493_vm7, %v1346_v13, %v1342_v8  ;;  %v3531_v13 = vld [vmem:[#allocation22_spill] sm:$0xff] }
 0x32c   :  { %v1208_v51 = vpop.permute.xlu1 %1207  ;;  %v1282_v36 = vrot.slane %v1166_v41, %v3528_v26 }
 0x32d   :  { %v1351_v57 = vrot.slane %v1208_v51, %v3526_v19  ;;  %v3529_v51 = vld [vmem:[#allocation20_spill] sm:$0xff] }
 0x32e   :  { %v1283_v61 = vsel %vm673_vm10, %v1282_v36, %v1278_v63 }
 0x32f   :  { %v3039_v52 = vpop.permute.xlu0 %1168 }
 0x330   :  { %v1211_v9 = vpop.permute.xlu1 %1210  ;;  %v1287_v34 = vrot.slane %v3039_v52, %v3529_v51 }
 0x331   :  { %v1356_v15 = vrot.slane %v1211_v9, %v3527_v62  ;;  %v1352_v9 = vsel %vm3492_vm8, %v1351_v57, %v1347_v1  ;;  %vm3533_vm8 = vcmask 786112  }
 0x332   :  { %vm3534_vm7 = vmmov %vm3533_vm8 }
 0x333   :  { %v3041_v25 = vpop.permute.xlu0 %1171  ;;  %v1357_v39 = vsel %vm666_vm9, %v1356_v15, %v1352_v9 }
 0x334   :  { %v1214_v2 = vpop.permute.xlu1 %1213  ;;  %v1292_v55 = vrot.slane %v3041_v25, %v3530_v6 }
 0x335   :  { %v1361_v24 = vrot.slane %v1214_v2, %v3528_v26 }
 0x337   :  { %v3043_v29 = vpop.permute.xlu0 %1174  ;;  %v1362_v30 = vsel %vm673_vm10, %v1361_v24, %v1357_v39 }
 0x338   :  { %v1217_v31 = vpop.permute.xlu1 %1216  ;;  %v1297_v52 = vrot.slane %v3043_v29, %v3531_v13 }
 0x339   :  { %v1366_v22 = vrot.slane %v1217_v31, %v3529_v51 }
 0x33b   :  { %v1178_v28 = vpop.permute.xlu0 %1177  ;;  %v1367_v4 = vsel %vm3534_vm7, %v1366_v22, %v1362_v30  ;;  %vm3552_vm7 = vcmask 589312  }
 0x33c   :  { %v1220_v38 = vpop.permute.xlu1 %1219  ;;  %v1302_v57 = vrot.slane %v1178_v28, %v3532_v60 }
 0x33d   :  { %v1371_v41 = vrot.slane %v1220_v38, %v3530_v6  ;;  %v1288_v38 = vsel %vm3533_vm8, %v1287_v34, %v1283_v61 }
 0x33e   :  { %v1293_v15 = vsel %vm687_vm12, %v1292_v55, %v1288_v38  ;;  %v3536_v55 = vld [vmem:[#allocation8_spill] sm:$0xff] }
 0x33f   :  { %v1181_v11 = vpop.permute.xlu0 %1180  ;;  %v1372_v29 = vsel %vm687_vm12, %v1371_v41, %v1367_v4 }
 0x340   :  { %v1223_v10 = vpop.permute.xlu1 %1222  ;;  %v1307_v46 = vrot.slane %v1181_v11, %v3535_v20  ;;  %v3537_v11 = vld [vmem:[#allocation9_spill] sm:$0xff] }
 0x341   :  { %v1376_v31 = vrot.slane %v1223_v10, %v3531_v13  ;;  %v1298_v10 = vsel %vm694_vm13, %v1297_v52, %v1293_v15 }
 0x342   :  { %v1303_v28 = vsel %vm701_vm14, %v1302_v57, %v1298_v10  ;;  %v3545_v10 = vld [vmem:[#allocation32_spill] sm:$0xff] }
 0x343   :  { %v1377_v8 = vsel %vm694_vm13, %v1376_v31, %v1372_v29  ;;  %v1308_v5 = vsel %vm708_vm15, %v1307_v46, %v1303_v28  ;;  %v3544_v29 = vld [vmem:[#allocation31_spill] sm:$0xff] }
 0x344   :  { %v1226_v2 = vpop.permute.xlu1 %1225 }
 0x345   :  { %v1381_v25 = vrot.slane %v1226_v2, %v3532_v60 }
 0x347   :  { %v1382_v24 = vsel %vm701_vm14, %v1381_v25, %v1377_v8 }
 0x348   :  { %v1229_v23 = vpop.permute.xlu1 %1228 }
 0x349   :  { %v1386_v36 = vrot.slane %v1229_v23, %v3535_v20 }
 0x34b   :  { %v1387_v1 = vsel %vm708_vm15, %v1386_v36, %v1382_v24  ;;  %v3546_v36 = vld [vmem:[#allocation33_spill] sm:$0xff]  ;;  %v3547_v24 = vld [vmem:[#allocation34_spill] sm:$0xff] }
 0x34c   :  { %v1388_v34 = vsel %vm789_vm0, %v1387_v1, %v1308_v5 }
 0x34d   :  { %v1390_v22 = vsel %vm792_vm11, %v1388_v34, 0.0 }
 0x34e   :  { %1391 = vadd.xlane.f32.xlu0 %v1390_v22 }
 0x3db   :  { %v1392_v33 = vpop.xlane.xlu0 %1391 }
 0x3dc   :  { %2087 = vrcp.f32 %v1392_v33  ;;  %v3548_v33 = vld [vmem:[#allocation10_spill] sm:$0xff] }
 0x3e6   :  { %v2088_v9 = vpop.eup %2087 }
 0x3e7   :  { %v3113_v41 = vrot.slane %v2088_v9, %v3536_v55  ;;  %v1402_v2 = vrot.slane %v2088_v9, %v3537_v11 }
 0x3e9   :  { %v1424_v63 = vmul.f32 %v1402_v2, %v2934_v21  ;;  %v1405_v39 = vmul.f32 %v3113_v41, %v2884_v59  ;;  %v1428_v52 = vmul.f32 %v1402_v2, %v2981_v50  ;;  %v1406_v31 = vmul.f32 %v3113_v41, %v2880_v7 }
 0x3ea   :  { %v1429_v61 = vmul.f32 %v1402_v2, %v2992_v32  ;;  %v1407_v30 = vmul.f32 %v3113_v41, %v2893_v44  ;;  %v1430_v21 = vmul.f32 %v1402_v2, %v3001_v43  ;;  %v1408_v59 = vmul.f32 %v3113_v41, %v2906_v12 }
 0x3eb   :  { %1534 = vperm.xlu0 %1958, %v1424_v63   ;;  %1439 = vperm.xlu1 %1957, %v1405_v39   ;;  %v1431_v50 = vmul.f32 %v1402_v2, %v3010_v45  ;;  %v1409_v7 = vmul.f32 %v3113_v41, %v2917_v40  ;;  %v1432_v32 = vmul.f32 %v1402_v2, %v3017_v56 }
 0x3ec   :  { %v1421_v44 = vmul.f32 %v1402_v2, %v2898_v14  ;;  %v1433_v43 = vmul.f32 %v1402_v2, %v3023_v37  ;;  %v1422_v57 = vmul.f32 %v1402_v2, %v2910_v35  ;;  %v1434_v12 = vmul.f32 %v1402_v2, %v3029_v0  ;;  %v3538_v0 = vld [vmem:[#allocation27_spill] sm:$0xff] }
 0x3ed   :  { %v1423_v45 = vmul.f32 %v1402_v2, %v2922_v54  ;;  %v1435_v40 = vmul.f32 %v1402_v2, %v3033_v27  ;;  %v1425_v56 = vmul.f32 %v1402_v2, %v2946_v48  ;;  %v1436_v14 = vmul.f32 %v1402_v2, %v3036_v49  ;;  %v3539_v48 = vld [vmem:[#allocation25_spill] sm:$0xff]  ;;  %v3540_v49 = vld [vmem:[#allocation26_spill] sm:$0xff] }
 0x3ee   :  { %v1410_v37 = vmul.f32 %v3113_v41, %v2929_v58  ;;  %v1426_v35 = vmul.f32 %v1402_v2, %v2958_v18  ;;  %v1411_v54 = vmul.f32 %v3113_v41, %v2941_v17  ;;  %v1427_v27 = vmul.f32 %v1402_v2, %v3538_v0  ;;  %v3541_v58 = vld [vmem:[#allocation28_spill] sm:$0xff]  ;;  %v3542_v18 = vld [vmem:[#allocation29_spill] sm:$0xff]  ;;  %v3543_v17 = vld [vmem:[#allocation30_spill] sm:$0xff] }
 0x3ef   :  { %1554 = vperm.xlu0 %1958, %v1428_v52   ;;  %1444 = vperm.xlu1 %1957, %v1406_v31   ;;  %v1412_v25 = vmul.f32 %v3113_v41, %v3539_v48  ;;  %v1413_v38 = vmul.f32 %v3113_v41, %v3540_v49  ;;  %v1414_v4 = vmul.f32 %v3113_v41, %v3541_v58  ;;  %v2093_v0 = vld [vmem:[%s3438_s1 + $0xa0] sm:$0xff] }
 0x3f0   :  { %v1415_v46 = vmul.f32 %v3113_v41, %v3542_v18  ;;  %v1416_v15 = vmul.f32 %v3113_v41, %v3543_v17  ;;  %v1417_v23 = vmul.f32 %v3113_v41, %v3544_v29  ;;  %v1418_v8 = vmul.f32 %v3113_v41, %v3545_v10  ;;  %v2095_v29 = vld [vmem:[%s3438_s1 + $0xb0] sm:$0xff] }
 0x3f1   :  { %v1419_v28 = vmul.f32 %v3113_v41, %v3546_v36  ;;  %v1420_v5 = vmul.f32 %v3113_v41, %v3547_v24 }
 0x3f3   :  { %1559 = vperm.xlu0 %1958, %v1429_v61   ;;  %1449 = vperm.xlu1 %1957, %v1407_v30  }
 0x3f7   :  { %1564 = vperm.xlu0 %1958, %v1430_v21   ;;  %1454 = vperm.xlu1 %1957, %v1408_v59   ;;  %v2089_v59 = vld [vmem:[%s3438_s1 + $0x88] sm:$0xff] }
 0x3fb   :  { %1569 = vperm.xlu0 %1958, %v1431_v50   ;;  %1459 = vperm.xlu1 %1957, %v1409_v7  }
 0x3ff   :  { %1574 = vperm.xlu0 %1958, %v1432_v32   ;;  %1519 = vperm.xlu1 %1957, %v1421_v44   ;;  %v2090_v32 = vld [vmem:[%s3438_s1 + $0x80] sm:$0xff] }
 0x403   :  { %1579 = vperm.xlu0 %1958, %v1433_v43   ;;  %1524 = vperm.xlu1 %1957, %v1422_v57   ;;  %v2091_v43 = vld [vmem:[%s3438_s1 + $0x90] sm:$0xff] }
 0x407   :  { %1584 = vperm.xlu0 %1958, %v1434_v12   ;;  %1529 = vperm.xlu1 %1957, %v1423_v45  }
 0x40b   :  { %1589 = vperm.xlu0 %1958, %v1435_v40   ;;  %1539 = vperm.xlu1 %1957, %v1425_v56  }
 0x40f   :  { %1594 = vperm.xlu0 %1958, %v1436_v14   ;;  %1464 = vperm.xlu1 %1957, %v1410_v37   ;;  %v2092_v37 = vld [vmem:[%s3438_s1 + $0x98] sm:$0xff] }
 0x413   :  { %1544 = vperm.xlu1 %1957, %v1426_v35  }
 0x417   :  { %1469 = vperm.xlu1 %1957, %v1411_v54  }
 0x41b   :  { %1549 = vperm.xlu1 %1957, %v1427_v27  }
 0x41f   :  { %1474 = vperm.xlu1 %1957, %v1412_v25   ;;  %v2094_v25 = vld [vmem:[%s3438_s1 + $0xa8] sm:$0xff] }
 0x423   :  { %1479 = vperm.xlu1 %1957, %v1413_v38  }
 0x427   :  { %1484 = vperm.xlu1 %1957, %v1414_v4  }
 0x42b   :  { %1489 = vperm.xlu1 %1957, %v1415_v46   ;;  %v3549_v46 = vld [vmem:[#allocation11_spill] sm:$0xff] }
 0x42f   :  { %1494 = vperm.xlu1 %1957, %v1416_v15  }
 0x433   :  { %1499 = vperm.xlu1 %1957, %v1417_v23  }
 0x437   :  { %1504 = vperm.xlu1 %1957, %v1418_v8   ;;  %v2096_v8 = vld [vmem:[%s3438_s1 + $0xb8] sm:$0xff] }
 0x43b   :  { %1509 = vperm.xlu1 %1957, %v1419_v28  }
 0x43f   :  { %1514 = vperm.xlu1 %1957, %v1420_v5  }
 0x46a   :  { %v3164_v1 = vpop.permute.xlu1 %1439  ;;  %v1535_v63 = vpop.permute.xlu0 %1534 }
 0x46b   :  { %v1679_v22 = vrot.slane %v3164_v1, %v2660_v47  ;;  %v1616_v35 = vmul.f32 %v2092_v37, %v1535_v63 }
 0x46e   :  { %v1445_v34 = vpop.permute.xlu1 %1444  ;;  %v3178_v52 = vpop.permute.xlu0 %1554 }
 0x46f   :  { %v1683_v9 = vrot.slane %v1445_v34, %v3548_v33  ;;  %v1620_v36 = vmul.f32 %v2096_v8, %v3178_v52 }
 0x471   :  { %v3170_v55 = vsel %vm610_vm1, %v1683_v9, %v1679_v22 }
 0x472   :  { %v3172_v11 = vpop.permute.xlu1 %1449  ;;  %v3180_v61 = vpop.permute.xlu0 %1559 }
 0x476   :  { %v3174_v2 = vpop.permute.xlu1 %1454  ;;  %v3185_v7 = vpop.permute.xlu0 %1564 }
 0x47a   :  { %v3176_v39 = vpop.permute.xlu1 %1459  ;;  %v3195_v56 = vpop.permute.xlu0 %1569 }
 0x47e   :  { %v1520_v41 = vpop.permute.xlu1 %1519  ;;  %v3208_v38 = vpop.permute.xlu0 %1574 }
 0x47f   :  { %v1613_v44 = vmul.f32 %v2090_v32, %v1520_v41  ;;  %v1758_v10 = vrot.slane %v1520_v41, %v2660_v47 }
 0x482   :  { %v1525_v31 = vpop.permute.xlu1 %1524  ;;  %v3220_v24 = vpop.permute.xlu0 %1579 }
 0x483   :  { %v1614_v50 = vmul.f32 %v2089_v59, %v1525_v31  ;;  %v1762_v4 = vrot.slane %v1525_v31, %v3548_v33  ;;  %v2097_v33 = vld [vmem:[%s3438_s1 + $0xc0] sm:$0xff] }
 0x484   :  { %v1621_v9 = vmul.f32 %v2097_v33, %v3180_v61  ;;  %v2106_v33 = vld [vmem:[%s3438_s1 + $0xe0] sm:$0xff] }
 0x485   :  { %v1650_v45 = vadd.f32 %v1614_v50, %v1613_v44  ;;  %v1763_v5 = vsel %vm610_vm1, %v1762_v4, %v1758_v10  ;;  %v2098_v50 = vld [vmem:[%s3438_s1 + $0x8] sm:$0xff]  ;;  %v2103_v4 = vld [vmem:[%s3438_s1 + $0x18] sm:$0xff]  ;;  %v1792_v10 = vrot.slane %v3178_v52, %v3525_v53  ;;  %vm3551_vm1 = vcmask 523712  }
 0x486   :  { %v1530_v30 = vpop.permute.xlu1 %1529  ;;  %v1598_v32 = vmul.f32 %v2098_v50, %v1445_v34  ;;  %v1797_v52 = vrot.slane %v3180_v61, %v3526_v19  ;;  %v2109_v61 = vld [vmem:[%s3438_s1 + $0x30] sm:$0xff] }
 0x487   :  { %v1615_v57 = vmul.f32 %v2091_v43, %v1530_v30  ;;  %v1767_v17 = vrot.slane %v1530_v30, %v3549_v46  ;;  %v3550_v30 = vld [vmem:[#allocation12_spill] sm:$0xff] }
 0x488   :  { %v1772_v59 = vrot.slane %v1535_v63, %v3550_v30  ;;  %v2099_v43 = vld [vmem:[%s3438_s1 + $0xc8] sm:$0xff]  ;;  %v2100_v63 = vld [vmem:[%s3438_s1] sm:$0xff] }
 0x489   :  { %v1651_v40 = vadd.f32 %v1650_v45, %v1615_v57  ;;  %v1768_v47 = vsel %vm617_vm2, %v1767_v17, %v1763_v5  ;;  %v1622_v57 = vmul.f32 %v2099_v43, %v3185_v7  ;;  %v2104_v17 = vld [vmem:[%s3438_s1 + $0xd8] sm:$0xff] }
 0x48a   :  { %v1540_v21 = vpop.permute.xlu1 %1539  ;;  %v1773_v37 = vsel %vm624_vm3, %v1772_v59, %v1768_v47  ;;  %v2107_v59 = vld [vmem:[%s3438_s1 + $0x28] sm:$0xff] }
 0x48b   :  { %v1652_v54 = vadd.f32 %v1651_v40, %v1616_v35  ;;  %v1617_v27 = vmul.f32 %v2093_v0, %v1540_v21  ;;  %v1777_v41 = vrot.slane %v1540_v21, %v3522_v16  ;;  %v1597_v21 = vmul.f32 %v2100_v63, %v3164_v1 }
 0x48d   :  { %v1653_v58 = vadd.f32 %v1652_v54, %v1617_v27  ;;  %v2102_v54 = vld [vmem:[%s3438_s1 + $0xd0] sm:$0xff]  ;;  %v1778_v27 = vsel %vm631_vm4, %v1777_v41, %v1773_v37  ;;  %v1629_v1 = vadd.f32 %v1598_v32, %v1597_v21  ;;  %v1802_v37 = vrot.slane %v3185_v7, %v3527_v62 }
 0x48e   :  { %v3193_v12 = vpop.permute.xlu1 %1464  ;;  %v1623_v0 = vmul.f32 %v2102_v54, %v3195_v56  ;;  %v1807_v7 = vrot.slane %v3195_v56, %v3528_v26 }
 0x48f   :  { %v1602_v50 = vmul.f32 %v2107_v59, %v3193_v12  ;;  %v1703_v56 = vrot.slane %v3193_v12, %v3523_v42  ;;  %v2116_v59 = vld [vmem:[%s3438_s1 + $0x58] sm:$0xff] }
 0x492   :  { %v1545_v14 = vpop.permute.xlu1 %1544 }
 0x493   :  { %v1618_v49 = vmul.f32 %v2094_v25, %v1545_v14  ;;  %v1782_v44 = vrot.slane %v1545_v14, %v3523_v42  ;;  %v2101_v14 = vld [vmem:[%s3438_s1 + $0x10] sm:$0xff] }
 0x494   :  { %v1599_v35 = vmul.f32 %v2101_v14, %v3172_v11 }
 0x495   :  { %v1654_v15 = vadd.f32 %v1653_v58, %v1618_v49  ;;  %v3257_v49 = vpop.permute.xlu0 %1584  ;;  %v1783_v58 = vsel %vm638_vm5, %v1782_v44, %v1778_v27  ;;  %v1688_v27 = vrot.slane %v3172_v11, %v3549_v46  ;;  %v2112_v11 = vld [vmem:[%s3438_s1 + $0x40] sm:$0xff]  ;;  %v1698_v46 = vrot.slane %v3176_v39, %v3522_v16 }
 0x496   :  { %v3203_v48 = vpop.permute.xlu1 %1469  ;;  %v1812_v16 = vrot.slane %v3208_v38, %v3529_v51 }
 0x497   :  { %v1603_v63 = vmul.f32 %v2109_v61, %v3203_v48 }
 0x499   :  { %v3288_v44 = vpop.permute.xlu0 %1589 }
 0x49a   :  { %v1550_v18 = vpop.permute.xlu1 %1549 }
 0x49b   :  { %v1619_v23 = vmul.f32 %v2095_v29, %v1550_v18  ;;  %v1787_v40 = vrot.slane %v1550_v18, %v3524_v3  ;;  %v1600_v18 = vmul.f32 %v2103_v4, %v3174_v2  ;;  %v2111_v4 = vld [vmem:[%s3438_s1 + $0xf0] sm:$0xff] }
 0x49d   :  { %v1655_v28 = vadd.f32 %v1654_v15, %v1619_v23  ;;  %v1624_v15 = vmul.f32 %v2104_v17, %v3208_v38  ;;  %v1788_v23 = vsel %vm645_vm6, %v1787_v40, %v1783_v58 }
 0x49e   :  { %v3223_v22 = vpop.permute.xlu1 %1474  ;;  %v1793_v41 = vsel %vm3551_vm1, %v1792_v10, %v1788_v23  ;;  %v2113_v23 = vld [vmem:[%s3438_s1 + $0x48] sm:$0xff] }
 0x49f   :  { %v1656_v31 = vadd.f32 %v1655_v28, %v1620_v36  ;;  %v1630_v36 = vadd.f32 %v1629_v1, %v1599_v35  ;;  %v2105_v28 = vld [vmem:[%s3438_s1 + $0x20] sm:$0xff]  ;;  %v1798_v21 = vsel %vm3552_vm7, %v1797_v52, %v1793_v41  ;;  %v2110_v35 = vld [vmem:[%s3438_s1 + $0x38] sm:$0xff] }
 0x4a0   :  { %v1601_v5 = vmul.f32 %v2105_v28, %v3176_v39  ;;  %v1604_v54 = vmul.f32 %v2110_v35, %v3223_v22  ;;  %v1803_v1 = vsel %vm666_vm9, %v1802_v37, %v1798_v21  ;;  %v1689_v28 = vsel %vm617_vm2, %v1688_v27, %v3170_v55  ;;  %v2115_v55 = vld [vmem:[%s3438_s1 + $0x50] sm:$0xff]  ;;  %vm3553_vm2 = vmmov %vm3533_vm8 }
 0x4a1   :  { %v1657_v45 = vadd.f32 %v1656_v31, %v1621_v9  ;;  %v1625_v9 = vmul.f32 %v2106_v33, %v3220_v24  ;;  %v1631_v31 = vadd.f32 %v1630_v36, %v1600_v18  ;;  %v1627_v18 = vmul.f32 %v2111_v4, %v3288_v44 }
 0x4a2   :  { %v3246_v34 = vpop.permute.xlu1 %1479  ;;  %v1708_v39 = vrot.slane %v3203_v48, %v3524_v3  ;;  %v1817_v3 = vrot.slane %v3220_v24, %v3530_v6  ;;  %v1713_v48 = vrot.slane %v3223_v22, %v3525_v53  ;;  %v1822_v21 = vrot.slane %v3257_v49, %v3531_v13 }
 0x4a3   :  { %v1658_v25 = vadd.f32 %v1657_v45, %v1622_v57  ;;  %v1632_v57 = vadd.f32 %v1631_v31, %v1601_v5  ;;  %v2108_v45 = vld [vmem:[%s3438_s1 + $0xe8] sm:$0xff]  ;;  %v2114_v5 = vld [vmem:[%s3438_s1 + $0xf8] sm:$0xff]  ;;  %v1718_v24 = vrot.slane %v3246_v34, %v3526_v19 }
 0x4a4   :  { %v1626_v40 = vmul.f32 %v2108_v45, %v3257_v49 }
 0x4a5   :  { %v1659_v29 = vadd.f32 %v1658_v25, %v1623_v0  ;;  %v1633_v14 = vadd.f32 %v1632_v57, %v1602_v50  ;;  %v1693_v25 = vrot.slane %v3174_v2, %v3550_v30  ;;  %v1605_v2 = vmul.f32 %v2112_v11, %v3246_v34  ;;  %v3326_v30 = vpop.permute.xlu0 %1594 }
 0x4a6   :  { %v3271_v8 = vpop.permute.xlu1 %1484  ;;  %v1628_v33 = vmul.f32 %v2114_v5, %v3326_v30  ;;  %v1832_v11 = vrot.slane %v3326_v30, %v3535_v20 }
 0x4a7   :  { %v1660_v47 = vadd.f32 %v1659_v29, %v1624_v15  ;;  %v1634_v17 = vadd.f32 %v1633_v14, %v1603_v63  ;;  %v1808_v15 = vsel %vm673_vm10, %v1807_v7, %v1803_v1  ;;  %v1606_v10 = vmul.f32 %v2113_v23, %v3271_v8 }
 0x4a8   :  { %v1694_v12 = vsel %vm624_vm3, %v1693_v25, %v1689_v28  ;;  %v1813_v41 = vsel %vm3553_vm2, %v1812_v16, %v1808_v15  ;;  %v1723_v53 = vrot.slane %v3271_v8, %v3527_v62  ;;  %vm3554_vm3 = vmmov %vm3551_vm1  ;;  %v2118_v8 = vld [vmem:[%s3438_s1 + $0x68] sm:$0xff] }
 0x4a9   :  { %v1661_v32 = vadd.f32 %v1660_v47, %v1625_v9  ;;  %v1635_v29 = vadd.f32 %v1634_v17, %v1604_v54  ;;  %v1699_v38 = vsel %vm631_vm4, %v1698_v46, %v1694_v12  ;;  %v1818_v63 = vsel %vm687_vm12, %v1817_v3, %v1813_v41  ;;  %vm3555_vm4 = vmmov %vm3552_vm7 }
 0x4aa   :  { %v3290_v43 = vpop.permute.xlu1 %1489  ;;  %v1704_v52 = vsel %vm638_vm5, %v1703_v56, %v1699_v38  ;;  %v1823_v27 = vsel %vm694_vm13, %v1822_v21, %v1818_v63  ;;  %vm3556_vm5 = vmmov %vm3553_vm2 }
 0x4ab   :  { %v1662_v0 = vadd.f32 %v1661_v32, %v1626_v40  ;;  %v1636_v9 = vadd.f32 %v1635_v29, %v1605_v2  ;;  %v1607_v47 = vmul.f32 %v2115_v55, %v3290_v43  ;;  %v1709_v57 = vsel %vm645_vm6, %v1708_v39, %v1704_v52  ;;  %v2117_v40 = vld [vmem:[%s3438_s1 + $0x60] sm:$0xff] }
 0x4ac   :  { %v1714_v37 = vsel %vm3554_vm3, %v1713_v48, %v1709_v57  ;;  %v1728_v19 = vrot.slane %v3290_v43, %v3528_v26 }
 0x4ad   :  { %v1663_v36 = vadd.f32 %v1662_v0, %v1627_v18  ;;  %v1637_v31 = vadd.f32 %v1636_v9, %v1606_v10  ;;  %v1719_v54 = vsel %vm3555_vm4, %v1718_v24, %v1714_v37 }
 0x4ae   :  { %v3312_v58 = vpop.permute.xlu1 %1494  ;;  %v1724_v25 = vsel %vm666_vm9, %v1723_v53, %v1719_v54 }
 0x4af   :  { %v1608_v50 = vmul.f32 %v2116_v59, %v3312_v58  ;;  %v1664_v32 = vadd.f32 %v1663_v36, %v1628_v33  ;;  %v1638_v22 = vadd.f32 %v1637_v31, %v1607_v47  ;;  %v1733_v62 = vrot.slane %v3312_v58, %v3529_v51  ;;  %v2119_v51 = vld [vmem:[%s3438_s1 + $0x70] sm:$0xff] }
 0x4b0   :  { %v1827_v58 = vrot.slane %v3288_v44, %v3532_v60  ;;  %v1729_v7 = vsel %vm673_vm10, %v1728_v19, %v1724_v25 }
 0x4b1   :  { %v1639_v34 = vadd.f32 %v1638_v22, %v1608_v50  ;;  %v1665_v35 = vrot.slane %v1664_v32, 4  ;;  %v1734_v4 = vsel %vm3556_vm5, %v1733_v62, %v1729_v7 }
 0x4b2   :  { %v1500_v42 = vpop.permute.xlu1 %1499  ;;  %v1828_v46 = vsel %vm701_vm14, %v1827_v58, %v1823_v27 }
 0x4b3   :  { %v1609_v61 = vmul.f32 %v2117_v40, %v1500_v42  ;;  %v1738_v0 = vrot.slane %v1500_v42, %v3530_v6  ;;  %v1666_v17 = vadd.f32 %v1665_v35, %v1664_v32  ;;  %v1833_v28 = vsel %vm708_vm15, %v1832_v11, %v1828_v46  ;;  %v2121_v42 = vld [vmem:[%s3440_s3] sm:$0x3] }
 0x4b5   :  { %v1640_v26 = vadd.f32 %v1639_v34, %v1609_v61  ;;  %v1667_v10 = vrot.slane %v1666_v17, 2 }
 0x4b6   :  { %v1505_v45 = vpop.permute.xlu1 %1504 }
 0x4b7   :  { %v1610_v14 = vmul.f32 %v2118_v8, %v1505_v45  ;;  %v1743_v43 = vrot.slane %v1505_v45, %v3531_v13  ;;  %v1739_v13 = vsel %vm687_vm12, %v1738_v0, %v1734_v4 }
 0x4b9   :  { %v1641_v18 = vadd.f32 %v1640_v26, %v1610_v14  ;;  %v1744_v44 = vsel %vm694_vm13, %v1743_v43, %v1739_v13 }
 0x4ba   :  { %v1510_v49 = vpop.permute.xlu1 %1509 }
 0x4bb   :  { %v1611_v1 = vmul.f32 %v2119_v51, %v1510_v49  ;;  %v1748_v6 = vrot.slane %v1510_v49, %v3532_v60  ;;  %v2120_v60 = vld [vmem:[%s3438_s1 + $0x78] sm:$0xff]  ;;  %s2122_s1 = scalar_lea.vmem %s1856_s7, 32 }
 0x4bc   :  { %p2123_p0 = scmp.ne.s32.totalorder %s1856_s7, %s2122_s1  ;;  %p2128_p2 = scmp.lt.s32.totalorder %s2122_s1, %s2122_s1 }
 0x4bd   :  { %v1642_v56 = vadd.f32 %v1641_v18, %v1611_v1  ;;  %v1749_v23 = vsel %vm701_vm14, %v1748_v6, %v1744_v44 }
 0x4be   :  { %v1515_v2 = vpop.permute.xlu1 %1514  ;;  %p2129_p3 = por %p2128_p2, %p2127_p1 }
 0x4bf   :  { %v1612_v15 = vmul.f32 %v2120_v60, %v1515_v2  ;;  %v1753_v29 = vrot.slane %v1515_v2, %v3535_v20 }
 0x4c0   :  { %p2130_p4 = pnand %p2129_p3, %p2123_p0 }
 0x4c1   :  { %v1643_v30 = vadd.f32 %v1642_v56, %v1612_v15  ;;  %v1754_v36 = vsel %vm708_vm15, %v1753_v29, %v1749_v23 }
 0x4c2   :  { %v1834_v16 = vsel %vm789_vm0, %v1833_v28, %v1754_v36 }
 0x4c3   :  { %v1644_v39 = vrot.slane %v1643_v30, 4  ;;  %1836 = vst [vmem:[#allocation4] sm:$0x3] %v1834_v16  ;;  %v1837_v12 = vadd.f32 %v2121_v42, %v1834_v16 }
 0x4c4   :  { %2133 = shalt.err (!%p2130_p4)
}
 0x4c5   :  { %s2134_s19 = scalar_lea.hbm %s3446_s9, 32 }
 0x4c6   :  { %p2135_p5 = scmp.ne.s32.totalorder %s3446_s9, %s2134_s19  ;;  %p2138_p6 = scmp.lt.u32.totalorder %s2134_s19, %s3446_s9 }
 0x4c8   :  { %p2140_p7 = pnand %p2138_p6, %p2135_p5 }
 0x4ca   :  { %2143 = shalt.err (!%p2140_p7)
}
 0x4cb   :  { %1858 = dma.vmem_to_hbm [thread:$0]  %s1856_s7, 32, %s3446_s9, [#allocation5]   ;;  %v1645_v20 = vadd.f32 %v1644_v39, %v1643_v30  ;;  %v1668_v5 = vadd.f32 %v1667_v10, %v1666_v17  ;;  %1838 = vst [vmem:[%s3447_s10] sm:$0x3] %v1837_v12 }
 0x4cc   :  { %s2176_s2 = smov [#allocation2]  }
 0x4cd   :  { %v1646_v33 = vrot.slane %v1645_v20, 2  ;;  %v1669_v55 = vrot.slane %v1668_v5, 1  ;;  %s1845_s27 = sshll.u32 %s2176_s2, 4  ;;  %s1846_s27 = int_to_ptr.vmem [resolvable:$true] %s1845_s27 }
 0x4ce   :  { %s2144_s28 = scalar_lea.vmem %s1846_s27, 32  ;;  %p2149_p9 = scmp.lt.s32.totalorder %s1846_s27, %s1846_s27 }
 0x4cf   :  { %v1647_v9 = vadd.f32 %v1646_v33, %v1645_v20  ;;  %v1670_v3 = vadd.f32 %v1669_v55, %v1668_v5  ;;  %p2145_p8 = scmp.ne.s32.totalorder %s1846_s27, %s2144_s28  ;;  %p2150_p10 = scmp.lt.s32.totalorder %s2144_s28, %s2144_s28 }
 0x4d1   :  { %v1648_v47 = vrot.slane %v1647_v9, 1  ;;  %p2151_p11 = por %p2150_p10, %p2149_p9 }
 0x4d3   :  { %v1649_v38 = vadd.f32 %v1648_v47, %v1647_v9  ;;  %p2152_p12 = pnand %p2151_p11, %p2145_p8 }
 0x4d5   :  { %v1673_v48 = vsel %vm789_vm0, %v1670_v3, %v1649_v38 }
 0x4d6   :  { %1675 = vst [vmem:[#allocation2] sm:$0x3] %v1673_v48 }
 0x4d7   :  { %2155 = shalt.err (!%p2152_p12)
}
 0x4d8   :  { %s2156_s0 = scalar_lea.hbm %s3445_s8, 32 }
 0x4d9   :  { %p2157_p13 = scmp.ne.s32.totalorder %s3445_s8, %s2156_s0  ;;  %p2160_p0 = scmp.lt.u32.totalorder %s2156_s0, %s3445_s8 }
 0x4db   :  { %p2162_p1 = pnand %p2160_p0, %p2157_p13 }
 0x4dd   :  { %2165 = shalt.err (!%p2162_p1)
}
 0x4de   :  { %1848 = dma.vmem_to_hbm [thread:$0]  %s1846_s27, 32, %s3445_s8, [#allocation3]  }
 0x4df   :  { %2166 = dma.done.wait [#allocation3], 32  }
 0x4e0   :  { %2167 = vsyncadd [#allocation3], 4294967264 }
 0x4e1   :  { %2168 = dma.done.wait [#allocation5], 32  }
 0x4e2   :  { %2169 = vsyncadd [#allocation5], 4294967264 }
 0x4e3   :  { %1869 = vsyncpa [#allocation3], 1 }
 0x4e4   :  { %1870 = vsyncpa [#allocation5], 1 }

</bundles_post_ra>
